<compile_context>
chip_gen: v7x
topology: tpu7x:2x2x1
jax: 0.10.0
libtpu: 0.0.40
codegen_flags: <defaults>
</compile_context>

<pallas_src>
import jax
import jax.numpy as jnp
from jax import lax
from jax.experimental import pallas as pl
from jax.experimental.pallas import tpu as pltpu


def _make_kernel(B, C, H, W, transpose_out):
    def kernel(x_ref, w_ref, b_ref, o_ref):
        # x_ref: (B, C, H, W)  VMEM  input block (native dtype, NCHW, no halo)
        # w_ref: (9 * C,)      SMEM  flipped weights: w[(di*3 + dj)*C + c]
        # b_ref: (1,)          SMEM  bias
        # o_ref: (B, H, W) or (B, W, H)  VMEM  f32 conv output block

        # 4 base border-validity comparisons (combined per tap below).
        row = lax.broadcasted_iota(jnp.int32, (H, W), 0)
        col = lax.broadcasted_iota(jnp.int32, (H, W), 1)
        m_row = {-1: row >= 1, 0: None, 1: row <= H - 2}
        m_col = {-1: col >= 1, 0: None, 1: col <= W - 2}

        bias = b_ref[0]

        def body(bi, carry):
            # Hoist + upcast each channel plane once per image (C vreg-sets
            # live) instead of 9 re-reads per tap.
            xc = [x_ref[bi, c, :, :].astype(jnp.float32) for c in range(C)]
            acc = None
            for di in range(3):
                oy = di - 1
                for dj in range(3):
                    ox = dj - 1
                    base = (di * 3 + dj) * C
                    # Lane-dense weighted channel sum for this tap (VPU);
                    # scalar weights broadcast from SMEM.
                    # TODO(synk): for C >= 8, offload this channel reduction
                    # to the MXU (dot of the (9, C) weight matrix against the
                    # channel-flattened block); the VPU path is only right for
                    # small C.
                    t = xc[0] * w_ref[base]
                    for c in range(1, C):
                        t = t + xc[c] * w_ref[base + c]
                    # Shift by (oy, ox) with zero fill: XLU roll + VPU mask.
                    if oy != 0:
                        t = pltpu.roll(t, shift=(-oy) % H, axis=0)
                    if ox != 0:
                        t = pltpu.roll(t, shift=(-ox) % W, axis=1)
                    m = m_row[oy]
                    mc = m_col[ox]
                    if m is None:
                        m = mc
                    elif mc is not None:
                        m = jnp.logical_and(m, mc)
                    if m is not None:
                        t = jnp.where(m, t, 0.0)
                    acc = t if acc is None else acc + t
            res = acc + bias
            if transpose_out:
                # Fold the (H, W) -> (W, H) output transpose into the kernel;
                # only used when H % 128 == 0 so the store stays lane-dense.
                res = jnp.swapaxes(res, 0, 1)
            o_ref[bi] = res.astype(o_ref.dtype)
            return carry

        lax.fori_loop(0, B, body, 0)

    return kernel


def _pick_batch_tile(N, C, H, W, in_bytes, *, min_grid_steps=4,
                     vmem_budget_bytes=12 * 1024 * 1024, max_tile=8):
    """Largest divisor of N that (a) keeps >= min_grid_steps grid steps when N
    allows and (b) fits the double-buffered input+output blocks in a budget
    below the smallest default scoped-VMEM limit (16 MiB on v5e)."""
    per_image = 2 * (C * H * W * in_bytes + H * W * 4)  # 2x: double-buffered
    max_by_vmem = max(1, vmem_budget_bytes // per_image)
    max_by_grid = max(1, N // min_grid_steps)
    cap = int(min(max_by_vmem, max_by_grid, max_tile, N))
    for cand in range(cap, 0, -1):
        if N % cand == 0:
            return cand
    return 1


def output_projection_forward(x_nchw, wt, bias):
    """Forward pass of OutputProjectionLayer.

    Args:
      x_nchw: (N, C, H, W) input (PyTorch NCHW convention), any float dtype.
      wt:     (C, 1, 3, 3) ConvTranspose2d weight.
      bias:   (1,) ConvTranspose2d bias.

    Returns:
      (N, W, H, 1) float32, matching torch.transpose(conv_out, 3, 1).
    """
    N, C, H, W = x_nchw.shape
    assert H >= 2 and W >= 2, "border masks assume H >= 2 and W >= 2"
    in_bytes = jnp.dtype(x_nchw.dtype).itemsize

    # Effective cross-correlation weights of the transposed conv:
    #   w_eff[di, dj, c] = wt[c, 0, 2 - di, 2 - dj]
    # flattened so that w_flat[(di*3 + dj)*C + c] = w_eff[di, dj, c].
    w_flat = jnp.transpose(wt[:, 0, ::-1, ::-1].astype(jnp.float32),
                           (1, 2, 0)).reshape(-1)                  # (9*C,)
    bias = bias.astype(jnp.float32).reshape(1)

    bt = _pick_batch_tile(N, C, H, W, in_bytes)
    transpose_in_kernel = (H % 128 == 0)
    # TODO(synk): when W % 128 != 0, pad/pack so the lane axis stays a >=128
    # multiple (masked loads/stores otherwise dominate the store path).

    kernel = _make_kernel(bt, C, H, W, transpose_in_kernel)

    out_block = (bt, W, H) if transpose_in_kernel else (bt, H, W)
    out_full = (N, W, H) if transpose_in_kernel else (N, H, W)

    per_step_bytes = 2 * bt * (C * H * W * in_bytes + H * W * 4)
    compiler_kwargs = dict(dimension_semantics=("parallel",))
    if per_step_bytes + (2 << 20) > 16 * 1024 * 1024:
        compiler_kwargs["vmem_limit_bytes"] = int(
            min(per_step_bytes + (4 << 20), 48 * 1024 * 1024))

    cost = pl.CostEstimate(
        flops=2 * 9 * C * N * H * W,
        transcendentals=0,
        bytes_accessed=N * C * H * W * in_bytes + N * H * W * 4,
    )

    conv = pl.pallas_call(
        kernel,
        out_shape=jax.ShapeDtypeStruct(out_full, jnp.float32),
        grid_spec=pltpu.PrefetchScalarGridSpec(
            num_scalar_prefetch=0,
            grid=(N // bt,),
            in_specs=[
                pl.BlockSpec((bt, C, H, W), lambda n: (n, 0, 0, 0)),
                pl.BlockSpec(memory_space=pltpu.MemorySpace.SMEM),
                pl.BlockSpec(memory_space=pltpu.MemorySpace.SMEM),
            ],
            out_specs=pl.BlockSpec(out_block, lambda n: (n, 0, 0)),
        ),
        compiler_params=pltpu.CompilerParams(**compiler_kwargs),
        cost_estimate=cost,
    )(x_nchw, w_flat, bias)

    if transpose_in_kernel:
        return conv[..., None]                                     # (N, W, H, 1)
    # TODO(synk): fold the (H, W) -> (W, H) transpose into the kernel also for
    # H % 128 != 0 (needs a lane-padded store to stay lane-dense).
    return jnp.transpose(conv, (0, 2, 1))[..., None]               # (N, W, H, 1)


def _reference(x_nchw, wt, bias):
    """Pure-JAX reference (ConvTranspose2d stride=1, padding=1 + transpose)."""
    N, C, H, W = x_nchw.shape
    x_pad = jnp.pad(x_nchw.astype(jnp.float32),
                    ((0, 0), (0, 0), (1, 1), (1, 1)))
    out = jnp.zeros((N, H, W), jnp.float32)
    for p in range(3):
        for q in range(3):
            sl = x_pad[:, :, 2 - p:2 - p + H, 2 - q:2 - q + W]     # (N, C, H, W)
            out = out + jnp.einsum('nchw,c->nhw', sl, wt[:, 0, p, q].astype(jnp.float32))
    out = out + bias[0]
    return jnp.transpose(out, (0, 2, 1))[..., None]                # (N, W, H, 1)


if __name__ == "__main__":
    key = jax.random.PRNGKey(0)
    k_x1, k_x2, k_w, k_b = jax.random.split(key, 4)

    C = 4
    fan_in = C * 3 * 3
    bound = 1.0 / (fan_in ** 0.5)
    wt = jax.random.uniform(k_w, (C, 1, 3, 3), jnp.float32, -bound, bound)
    bias = jax.random.uniform(k_b, (1,), jnp.float32, -bound, bound)

    # Config 1: f32 input, H % 128 != 0 -> lane-dense (H, W) stores + XLA
    # output transpose; bt=2 gives a 4-step "parallel" grid (megacore + DMA
    # overlap).
    N1, H1, W1 = 8, 64, 128
    x1 = jax.random.normal(k_x1, (N1, C, H1, W1), dtype=jnp.float32)
    out1 = jax.block_until_ready(output_projection_forward(x1, wt, bias))
    ref1 = _reference(x1, wt, bias)
    assert out1.shape == (N1, W1, H1, 1), out1.shape
    assert jnp.allclose(out1, ref1, atol=1e-4, rtol=1e-4), "mismatch (config 1)"

    # Config 2: bf16 input (upcast per-tile inside the kernel -> half the
    # input DMA) with H % 128 == 0, so the (H, W) -> (W, H) transpose is
    # folded into the kernel store.
    N2, H2, W2 = 4, 128, 128
    x2 = jax.random.normal(k_x2, (N2, C, H2, W2),
                           dtype=jnp.float32).astype(jnp.bfloat16)
    out2 = jax.block_until_ready(output_projection_forward(x2, wt, bias))
    ref2 = _reference(x2, wt, bias)
    assert out2.shape == (N2, W2, H2, 1), out2.shape
    assert jnp.allclose(out2, ref2, atol=1e-3, rtol=1e-3), "mismatch (config 2)"

    print("KERNEL_OK")
</pallas_src>

<mosaic_0001>
module attributes {stable_mosaic.version = 11 : i64} {
  func.func @kernel(%arg0: i32, %arg1: memref<2x4x64x128xf32, #tpu.memory_space<vmem>>, %arg2: memref<36xf32, #tpu.memory_space<smem>>, %arg3: memref<1xf32, #tpu.memory_space<smem>>, %arg4: memref<2x64x128xf32, #tpu.memory_space<vmem>>) attributes {dimension_semantics = [#tpu.dimension_semantics<parallel>], iteration_bounds = array<i64: 4>, scalar_prefetch = 0 : i64, scratch_operands = 0 : i64, tpu.core_type = #tpu.core_type<tc>, window_params = [{transform_indices = @transform_0, window_bounds = array<i64: 2, 4, 64, 128>}, {transform_indices = @transform_1, window_bounds = array<i64: 36>}, {transform_indices = @transform_2, window_bounds = array<i64: 1>}, {transform_indices = @transform_3, window_bounds = array<i64: 2, 64, 128>}]} {
    %0 = tpu.iota {dimensions = array<i32: 0>} : vector<64x128xi32>
    %1 = tpu.iota {dimensions = array<i32: 1>} : vector<64x128xi32>
    %c1_i32 = arith.constant 1 : i32
    %2 = vector.broadcast %c1_i32 : i32 to vector<64x128xi32>
    %3 = arith.cmpi sge, %0, %2 : vector<64x128xi32>
    %c62_i32 = arith.constant 62 : i32
    %4 = vector.broadcast %c62_i32 : i32 to vector<64x128xi32>
    %5 = arith.cmpi sle, %0, %4 : vector<64x128xi32>
    %c1_i32_0 = arith.constant 1 : i32
    %6 = vector.broadcast %c1_i32_0 : i32 to vector<64x128xi32>
    %7 = arith.cmpi sge, %1, %6 : vector<64x128xi32>
    %c126_i32 = arith.constant 126 : i32
    %8 = vector.broadcast %c126_i32 : i32 to vector<64x128xi32>
    %9 = arith.cmpi sle, %1, %8 : vector<64x128xi32>
    %c0 = arith.constant 0 : index
    %10 = memref.load %arg3[%c0] : memref<1xf32, #tpu.memory_space<smem>>
    %c0_i32 = arith.constant 0 : i32
    %c2_i32 = arith.constant 2 : i32
    %11 = arith.addi %c0_i32, %c2_i32 : i32
    %c1_i32_1 = arith.constant 1 : i32
    scf.for %arg5 = %c0_i32 to %11 step %c1_i32_1  : i32 {
      %12 = arith.index_cast %arg5 : i32 to index
      %c0_3 = arith.constant 0 : index
      %c0_4 = arith.constant 0 : index
      %c0_5 = arith.constant 0 : index
      %13 = vector.load %arg1[%12, %c0_3, %c0_4, %c0_5] : memref<2x4x64x128xf32, #tpu.memory_space<vmem>>, vector<1x1x64x128xf32>
      %14 = vector.shape_cast %13 : vector<1x1x64x128xf32> to vector<64x128xf32>
      %15 = arith.index_cast %arg5 : i32 to index
      %c1 = arith.constant 1 : index
      %c0_6 = arith.constant 0 : index
      %c0_7 = arith.constant 0 : index
      %16 = vector.load %arg1[%15, %c1, %c0_6, %c0_7] : memref<2x4x64x128xf32, #tpu.memory_space<vmem>>, vector<1x1x64x128xf32>
      %17 = vector.shape_cast %16 : vector<1x1x64x128xf32> to vector<64x128xf32>
      %18 = arith.index_cast %arg5 : i32 to index
      %c2 = arith.constant 2 : index
      %c0_8 = arith.constant 0 : index
      %c0_9 = arith.constant 0 : index
      %19 = vector.load %arg1[%18, %c2, %c0_8, %c0_9] : memref<2x4x64x128xf32, #tpu.memory_space<vmem>>, vector<1x1x64x128xf32>
      %20 = vector.shape_cast %19 : vector<1x1x64x128xf32> to vector<64x128xf32>
      %21 = arith.index_cast %arg5 : i32 to index
      %c3 = arith.constant 3 : index
      %c0_10 = arith.constant 0 : index
      %c0_11 = arith.constant 0 : index
      %22 = vector.load %arg1[%21, %c3, %c0_10, %c0_11] : memref<2x4x64x128xf32, #tpu.memory_space<vmem>>, vector<1x1x64x128xf32>
      %23 = vector.shape_cast %22 : vector<1x1x64x128xf32> to vector<64x128xf32>
      %c0_12 = arith.constant 0 : index
      %24 = memref.load %arg2[%c0_12] : memref<36xf32, #tpu.memory_space<smem>>
      %25 = vector.broadcast %24 : f32 to vector<64x128xf32>
      %26 = arith.mulf %14, %25 : vector<64x128xf32>
      %c1_13 = arith.constant 1 : index
      %27 = memref.load %arg2[%c1_13] : memref<36xf32, #tpu.memory_space<smem>>
      %28 = vector.broadcast %27 : f32 to vector<64x128xf32>
      %29 = arith.mulf %17, %28 : vector<64x128xf32>
      %30 = arith.addf %26, %29 : vector<64x128xf32>
      %c2_14 = arith.constant 2 : index
      %31 = memref.load %arg2[%c2_14] : memref<36xf32, #tpu.memory_space<smem>>
      %32 = vector.broadcast %31 : f32 to vector<64x128xf32>
      %33 = arith.mulf %20, %32 : vector<64x128xf32>
      %34 = arith.addf %30, %33 : vector<64x128xf32>
      %c3_15 = arith.constant 3 : index
      %35 = memref.load %arg2[%c3_15] : memref<36xf32, #tpu.memory_space<smem>>
      %36 = vector.broadcast %35 : f32 to vector<64x128xf32>
      %37 = arith.mulf %23, %36 : vector<64x128xf32>
      %38 = arith.addf %34, %37 : vector<64x128xf32>
      %c1_i32_16 = arith.constant 1 : i32
      %39 = tpu.dynamic_rotate %38 by %c1_i32_16 dim 0 : vector<64x128xf32>, i32 -> vector<64x128xf32>
      %c1_i32_17 = arith.constant 1 : i32
      %40 = tpu.dynamic_rotate %39 by %c1_i32_17 dim 1 : vector<64x128xf32>, i32 -> vector<64x128xf32>
      %41 = arith.andi %3, %7 : vector<64x128xi1>
      %cst = arith.constant 0.000000e+00 : f32
      %42 = vector.broadcast %cst : f32 to vector<64x128xf32>
      %43 = arith.select %41, %40, %42 : vector<64x128xi1>, vector<64x128xf32>
      %c4 = arith.constant 4 : index
      %44 = memref.load %arg2[%c4] : memref<36xf32, #tpu.memory_space<smem>>
      %45 = vector.broadcast %44 : f32 to vector<64x128xf32>
      %46 = arith.mulf %14, %45 : vector<64x128xf32>
      %c5 = arith.constant 5 : index
      %47 = memref.load %arg2[%c5] : memref<36xf32, #tpu.memory_space<smem>>
      %48 = vector.broadcast %47 : f32 to vector<64x128xf32>
      %49 = arith.mulf %17, %48 : vector<64x128xf32>
      %50 = arith.addf %46, %49 : vector<64x128xf32>
      %c6 = arith.constant 6 : index
      %51 = memref.load %arg2[%c6] : memref<36xf32, #tpu.memory_space<smem>>
      %52 = vector.broadcast %51 : f32 to vector<64x128xf32>
      %53 = arith.mulf %20, %52 : vector<64x128xf32>
      %54 = arith.addf %50, %53 : vector<64x128xf32>
      %c7 = arith.constant 7 : index
      %55 = memref.load %arg2[%c7] : memref<36xf32, #tpu.memory_space<smem>>
      %56 = vector.broadcast %55 : f32 to vector<64x128xf32>
      %57 = arith.mulf %23, %56 : vector<64x128xf32>
      %58 = arith.addf %54, %57 : vector<64x128xf32>
      %c1_i32_18 = arith.constant 1 : i32
      %59 = tpu.dynamic_rotate %58 by %c1_i32_18 dim 0 : vector<64x128xf32>, i32 -> vector<64x128xf32>
      %cst_19 = arith.constant 0.000000e+00 : f32
      %60 = vector.broadcast %cst_19 : f32 to vector<64x128xf32>
      %61 = arith.select %3, %59, %60 : vector<64x128xi1>, vector<64x128xf32>
      %62 = arith.addf %43, %61 : vector<64x128xf32>
      %c8 = arith.constant 8 : index
      %63 = memref.load %arg2[%c8] : memref<36xf32, #tpu.memory_space<smem>>
      %64 = vector.broadcast %63 : f32 to vector<64x128xf32>
      %65 = arith.mulf %14, %64 : vector<64x128xf32>
      %c9 = arith.constant 9 : index
      %66 = memref.load %arg2[%c9] : memref<36xf32, #tpu.memory_space<smem>>
      %67 = vector.broadcast %66 : f32 to vector<64x128xf32>
      %68 = arith.mulf %17, %67 : vector<64x128xf32>
      %69 = arith.addf %65, %68 : vector<64x128xf32>
      %c10 = arith.constant 10 : index
      %70 = memref.load %arg2[%c10] : memref<36xf32, #tpu.memory_space<smem>>
      %71 = vector.broadcast %70 : f32 to vector<64x128xf32>
      %72 = arith.mulf %20, %71 : vector<64x128xf32>
      %73 = arith.addf %69, %72 : vector<64x128xf32>
      %c11 = arith.constant 11 : index
      %74 = memref.load %arg2[%c11] : memref<36xf32, #tpu.memory_space<smem>>
      %75 = vector.broadcast %74 : f32 to vector<64x128xf32>
      %76 = arith.mulf %23, %75 : vector<64x128xf32>
      %77 = arith.addf %73, %76 : vector<64x128xf32>
      %c1_i32_20 = arith.constant 1 : i32
      %78 = tpu.dynamic_rotate %77 by %c1_i32_20 dim 0 : vector<64x128xf32>, i32 -> vector<64x128xf32>
      %c127_i32 = arith.constant 127 : i32
      %79 = tpu.dynamic_rotate %78 by %c127_i32 dim 1 : vector<64x128xf32>, i32 -> vector<64x128xf32>
      %80 = arith.andi %3, %9 : vector<64x128xi1>
      %cst_21 = arith.constant 0.000000e+00 : f32
      %81 = vector.broadcast %cst_21 : f32 to vector<64x128xf32>
      %82 = arith.select %80, %79, %81 : vector<64x128xi1>, vector<64x128xf32>
      %83 = arith.addf %62, %82 : vector<64x128xf32>
      %c12 = arith.constant 12 : index
      %84 = memref.load %arg2[%c12] : memref<36xf32, #tpu.memory_space<smem>>
      %85 = vector.broadcast %84 : f32 to vector<64x128xf32>
      %86 = arith.mulf %14, %85 : vector<64x128xf32>
      %c13 = arith.constant 13 : index
      %87 = memref.load %arg2[%c13] : memref<36xf32, #tpu.memory_space<smem>>
      %88 = vector.broadcast %87 : f32 to vector<64x128xf32>
      %89 = arith.mulf %17, %88 : vector<64x128xf32>
      %90 = arith.addf %86, %89 : vector<64x128xf32>
      %c14 = arith.constant 14 : index
      %91 = memref.load %arg2[%c14] : memref<36xf32, #tpu.memory_space<smem>>
      %92 = vector.broadcast %91 : f32 to vector<64x128xf32>
      %93 = arith.mulf %20, %92 : vector<64x128xf32>
      %94 = arith.addf %90, %93 : vector<64x128xf32>
      %c15 = arith.constant 15 : index
      %95 = memref.load %arg2[%c15] : memref<36xf32, #tpu.memory_space<smem>>
      %96 = vector.broadcast %95 : f32 to vector<64x128xf32>
      %97 = arith.mulf %23, %96 : vector<64x128xf32>
      %98 = arith.addf %94, %97 : vector<64x128xf32>
      %c1_i32_22 = arith.constant 1 : i32
      %99 = tpu.dynamic_rotate %98 by %c1_i32_22 dim 1 : vector<64x128xf32>, i32 -> vector<64x128xf32>
      %cst_23 = arith.constant 0.000000e+00 : f32
      %100 = vector.broadcast %cst_23 : f32 to vector<64x128xf32>
      %101 = arith.select %7, %99, %100 : vector<64x128xi1>, vector<64x128xf32>
      %102 = arith.addf %83, %101 : vector<64x128xf32>
      %c16 = arith.constant 16 : index
      %103 = memref.load %arg2[%c16] : memref<36xf32, #tpu.memory_space<smem>>
      %104 = vector.broadcast %103 : f32 to vector<64x128xf32>
      %105 = arith.mulf %14, %104 : vector<64x128xf32>
      %c17 = arith.constant 17 : index
      %106 = memref.load %arg2[%c17] : memref<36xf32, #tpu.memory_space<smem>>
      %107 = vector.broadcast %106 : f32 to vector<64x128xf32>
      %108 = arith.mulf %17, %107 : vector<64x128xf32>
      %109 = arith.addf %105, %108 : vector<64x128xf32>
      %c18 = arith.constant 18 : index
      %110 = memref.load %arg2[%c18] : memref<36xf32, #tpu.memory_space<smem>>
      %111 = vector.broadcast %110 : f32 to vector<64x128xf32>
      %112 = arith.mulf %20, %111 : vector<64x128xf32>
      %113 = arith.addf %109, %112 : vector<64x128xf32>
      %c19 = arith.constant 19 : index
      %114 = memref.load %arg2[%c19] : memref<36xf32, #tpu.memory_space<smem>>
      %115 = vector.broadcast %114 : f32 to vector<64x128xf32>
      %116 = arith.mulf %23, %115 : vector<64x128xf32>
      %117 = arith.addf %113, %116 : vector<64x128xf32>
      %118 = arith.addf %102, %117 : vector<64x128xf32>
      %c20 = arith.constant 20 : index
      %119 = memref.load %arg2[%c20] : memref<36xf32, #tpu.memory_space<smem>>
      %120 = vector.broadcast %119 : f32 to vector<64x128xf32>
      %121 = arith.mulf %14, %120 : vector<64x128xf32>
      %c21 = arith.constant 21 : index
      %122 = memref.load %arg2[%c21] : memref<36xf32, #tpu.memory_space<smem>>
      %123 = vector.broadcast %122 : f32 to vector<64x128xf32>
      %124 = arith.mulf %17, %123 : vector<64x128xf32>
      %125 = arith.addf %121, %124 : vector<64x128xf32>
      %c22 = arith.constant 22 : index
      %126 = memref.load %arg2[%c22] : memref<36xf32, #tpu.memory_space<smem>>
      %127 = vector.broadcast %126 : f32 to vector<64x128xf32>
      %128 = arith.mulf %20, %127 : vector<64x128xf32>
      %129 = arith.addf %125, %128 : vector<64x128xf32>
      %c23 = arith.constant 23 : index
      %130 = memref.load %arg2[%c23] : memref<36xf32, #tpu.memory_space<smem>>
      %131 = vector.broadcast %130 : f32 to vector<64x128xf32>
      %132 = arith.mulf %23, %131 : vector<64x128xf32>
      %133 = arith.addf %129, %132 : vector<64x128xf32>
      %c127_i32_24 = arith.constant 127 : i32
      %134 = tpu.dynamic_rotate %133 by %c127_i32_24 dim 1 : vector<64x128xf32>, i32 -> vector<64x128xf32>
      %cst_25 = arith.constant 0.000000e+00 : f32
      %135 = vector.broadcast %cst_25 : f32 to vector<64x128xf32>
      %136 = arith.select %9, %134, %135 : vector<64x128xi1>, vector<64x128xf32>
      %137 = arith.addf %118, %136 : vector<64x128xf32>
      %c24 = arith.constant 24 : index
      %138 = memref.load %arg2[%c24] : memref<36xf32, #tpu.memory_space<smem>>
      %139 = vector.broadcast %138 : f32 to vector<64x128xf32>
      %140 = arith.mulf %14, %139 : vector<64x128xf32>
      %c25 = arith.constant 25 : index
      %141 = memref.load %arg2[%c25] : memref<36xf32, #tpu.memory_space<smem>>
      %142 = vector.broadcast %141 : f32 to vector<64x128xf32>
      %143 = arith.mulf %17, %142 : vector<64x128xf32>
      %144 = arith.addf %140, %143 : vector<64x128xf32>
      %c26 = arith.constant 26 : index
      %145 = memref.load %arg2[%c26] : memref<36xf32, #tpu.memory_space<smem>>
      %146 = vector.broadcast %145 : f32 to vector<64x128xf32>
      %147 = arith.mulf %20, %146 : vector<64x128xf32>
      %148 = arith.addf %144, %147 : vector<64x128xf32>
      %c27 = arith.constant 27 : index
      %149 = memref.load %arg2[%c27] : memref<36xf32, #tpu.memory_space<smem>>
      %150 = vector.broadcast %149 : f32 to vector<64x128xf32>
      %151 = arith.mulf %23, %150 : vector<64x128xf32>
      %152 = arith.addf %148, %151 : vector<64x128xf32>
      %c63_i32 = arith.constant 63 : i32
      %153 = tpu.dynamic_rotate %152 by %c63_i32 dim 0 : vector<64x128xf32>, i32 -> vector<64x128xf32>
      %c1_i32_26 = arith.constant 1 : i32
      %154 = tpu.dynamic_rotate %153 by %c1_i32_26 dim 1 : vector<64x128xf32>, i32 -> vector<64x128xf32>
      %155 = arith.andi %5, %7 : vector<64x128xi1>
      %cst_27 = arith.constant 0.000000e+00 : f32
      %156 = vector.broadcast %cst_27 : f32 to vector<64x128xf32>
      %157 = arith.select %155, %154, %156 : vector<64x128xi1>, vector<64x128xf32>
      %158 = arith.addf %137, %157 : vector<64x128xf32>
      %c28 = arith.constant 28 : index
      %159 = memref.load %arg2[%c28] : memref<36xf32, #tpu.memory_space<smem>>
      %160 = vector.broadcast %159 : f32 to vector<64x128xf32>
      %161 = arith.mulf %14, %160 : vector<64x128xf32>
      %c29 = arith.constant 29 : index
      %162 = memref.load %arg2[%c29] : memref<36xf32, #tpu.memory_space<smem>>
      %163 = vector.broadcast %162 : f32 to vector<64x128xf32>
      %164 = arith.mulf %17, %163 : vector<64x128xf32>
      %165 = arith.addf %161, %164 : vector<64x128xf32>
      %c30 = arith.constant 30 : index
      %166 = memref.load %arg2[%c30] : memref<36xf32, #tpu.memory_space<smem>>
      %167 = vector.broadcast %166 : f32 to vector<64x128xf32>
      %168 = arith.mulf %20, %167 : vector<64x128xf32>
      %169 = arith.addf %165, %168 : vector<64x128xf32>
      %c31 = arith.constant 31 : index
      %170 = memref.load %arg2[%c31] : memref<36xf32, #tpu.memory_space<smem>>
      %171 = vector.broadcast %170 : f32 to vector<64x128xf32>
      %172 = arith.mulf %23, %171 : vector<64x128xf32>
      %173 = arith.addf %169, %172 : vector<64x128xf32>
      %c63_i32_28 = arith.constant 63 : i32
      %174 = tpu.dynamic_rotate %173 by %c63_i32_28 dim 0 : vector<64x128xf32>, i32 -> vector<64x128xf32>
      %cst_29 = arith.constant 0.000000e+00 : f32
      %175 = vector.broadcast %cst_29 : f32 to vector<64x128xf32>
      %176 = arith.select %5, %174, %175 : vector<64x128xi1>, vector<64x128xf32>
      %177 = arith.addf %158, %176 : vector<64x128xf32>
      %c32 = arith.constant 32 : index
      %178 = memref.load %arg2[%c32] : memref<36xf32, #tpu.memory_space<smem>>
      %179 = vector.broadcast %178 : f32 to vector<64x128xf32>
      %180 = arith.mulf %14, %179 : vector<64x128xf32>
      %c33 = arith.constant 33 : index
      %181 = memref.load %arg2[%c33] : memref<36xf32, #tpu.memory_space<smem>>
      %182 = vector.broadcast %181 : f32 to vector<64x128xf32>
      %183 = arith.mulf %17, %182 : vector<64x128xf32>
      %184 = arith.addf %180, %183 : vector<64x128xf32>
      %c34 = arith.constant 34 : index
      %185 = memref.load %arg2[%c34] : memref<36xf32, #tpu.memory_space<smem>>
      %186 = vector.broadcast %185 : f32 to vector<64x128xf32>
      %187 = arith.mulf %20, %186 : vector<64x128xf32>
      %188 = arith.addf %184, %187 : vector<64x128xf32>
      %c35 = arith.constant 35 : index
      %189 = memref.load %arg2[%c35] : memref<36xf32, #tpu.memory_space<smem>>
      %190 = vector.broadcast %189 : f32 to vector<64x128xf32>
      %191 = arith.mulf %23, %190 : vector<64x128xf32>
      %192 = arith.addf %188, %191 : vector<64x128xf32>
      %c63_i32_30 = arith.constant 63 : i32
      %193 = tpu.dynamic_rotate %192 by %c63_i32_30 dim 0 : vector<64x128xf32>, i32 -> vector<64x128xf32>
      %c127_i32_31 = arith.constant 127 : i32
      %194 = tpu.dynamic_rotate %193 by %c127_i32_31 dim 1 : vector<64x128xf32>, i32 -> vector<64x128xf32>
      %195 = arith.andi %5, %9 : vector<64x128xi1>
      %cst_32 = arith.constant 0.000000e+00 : f32
      %196 = vector.broadcast %cst_32 : f32 to vector<64x128xf32>
      %197 = arith.select %195, %194, %196 : vector<64x128xi1>, vector<64x128xf32>
      %198 = arith.addf %177, %197 : vector<64x128xf32>
      %199 = vector.broadcast %10 : f32 to vector<64x128xf32>
      %200 = arith.addf %198, %199 : vector<64x128xf32>
      %201 = arith.index_cast %arg5 : i32 to index
      %c0_33 = arith.constant 0 : index
      %c0_34 = arith.constant 0 : index
      %202 = vector.load %arg4[%201, %c0_33, %c0_34] : memref<2x64x128xf32, #tpu.memory_space<vmem>>, vector<1x64x128xf32>
      %203 = vector.shape_cast %202 : vector<1x64x128xf32> to vector<64x128xf32>
      %204 = vector.shape_cast %200 : vector<64x128xf32> to vector<1x64x128xf32>
      tpu.vector_store %arg4[%201, %c0_33, %c0_34], %204 {strides = array<i32>} : memref<2x64x128xf32, #tpu.memory_space<vmem>>, vector<1x64x128xf32>,
    }
    %c2_i32_2 = arith.constant 2 : i32
    return
  }
  func.func @transform_0(%arg0: i32) -> (i32, i32, i32, i32) {
    %c0_i32 = arith.constant 0 : i32
    %c0_i32_0 = arith.constant 0 : i32
    %c0_i32_1 = arith.constant 0 : i32
    %c0_i32_2 = arith.constant 0 : i32
    return %arg0, %c0_i32, %c0_i32_0, %c0_i32_1 : i32, i32, i32, i32
  }
  func.func @transform_1(%arg0: i32) -> i32 {
    %c0_i32 = arith.constant 0 : i32
    %c0_i32_0 = arith.constant 0 : i32
    return %c0_i32 : i32
  }
  func.func @transform_2(%arg0: i32) -> i32 {
    %c0_i32 = arith.constant 0 : i32
    %c0_i32_0 = arith.constant 0 : i32
    return %c0_i32 : i32
  }
  func.func @transform_3(%arg0: i32) -> (i32, i32, i32) {
    %c0_i32 = arith.constant 0 : i32
    %c0_i32_0 = arith.constant 0 : i32
    %c0_i32_1 = arith.constant 0 : i32
    return %arg0, %c0_i32, %c0_i32_0 : i32, i32, i32
  }
}

</mosaic_0001>

<bundles_post_ra>
// kernel: tpu_custom_call.1
= control target key start
LH: loop header
LB: loop body
LE: loop exit
PB: predicated region body
PF: predicated region fallthrough
CT: control target
= control target key end

     0   :  { %s3279_s0 = inlined_call_operand.hbm [shape: f32[8,4,64,128], index: 0, kind: input, shape index: {}]   ;;  %s3280_s1 = inlined_call_operand.vmem [shape: f32[36], index: 1, kind: input, shape index: {}]   ;;  %s3281_s2 = inlined_call_operand.<no memory space> [shape: f32[1], index: 2, kind: input, shape index: {}]   ;;  %s3282_s3 = inlined_call_operand.hbm [shape: f32[8,64,128], index: 3, kind: output, shape index: {}]  }
   0x1   :  { %8 = sst [smem:[#allocation2]] %s3281_s2 }
   0x2   :  { %9 = vsyncpa [#allocation4], 0 }
   0x3   :  { %11 = vsyncpa [#allocation4 + $0x1], 0 }
   0x4   :  { %12 = vsyncpa [#allocation6], 0 }
   0x5   :  { %13 = vsyncpa [#allocation5], 0 }
   0x6   :  { %15 = vsyncpa [#allocation5 + $0x1], 0  ;;  %s1696_s14 = smov 0   ;;  %s1698_s15 = smov 0  }
   0x7   :  { %s1700_s16 = smov 0   ;;  %s1702_s17 = smov 0  }
   0x8 LB: > { %s1717_s2 = sadd.s32 4294967295, %s1658_s17   ;;  %s1350_s18 = sadd.s32 4294967294, %s1658_s17   ;;  %s1658_s17 = sphi %s1702_s17, %s3372_s17   ;;  %s1654_s16 = sphi %s1700_s16, %s3371_s16   ;;  %s1650_s15 = sphi %s1698_s15, %s3370_s15   ;;  %s1646_s14 = sphi %s1696_s14, %s3369_s14  }
   0x9   : > { %s1721_s19 = sadd.s32 1, %s1658_s17   ;;  %s28_s20 = sadd.s32 1, %s1654_s16 }
   0xa   : > { %s25_s21 = ssub.s32 %s1658_s17, %s1721_s19  ;;  %p35_p0 = scmp.ne.s32.totalorder %s1654_s16, %s1650_s15 }
   0xb   : > { %p26_p1 = scmp.eq.s32.totalorder %s25_s21, 0  ;;  %p36_p2 = scmp.eq.s32.totalorder %s1658_s17, 0 }
   0xc   : > { %p41_p3 = scmp.ne.s32.totalorder %s1650_s15, %s1646_s14  ;;  %p3284_p4 = scmp.eq.s32.totalorder %s1717_s2, 0 }
   0xd   : > { %s1733_s22 = scalar_select %p26_p1, %s1654_s16, %s28_s20  }
   0xe   : > { %p1735_p5 = por %p36_p2, %p35_p0  ;;  %p1741_p6 = por %p3284_p4, %p41_p3 }
   0xf   : > { %p107_p7 = scmp.eq.s32.totalorder %s1717_s2, 3  ;;  %p113_p8 = scmp.eq.s32.totalorder %s1350_s18, 3 }
  0x10   : > { %s3294_s24 = scalar_select %p1741_p6, 1, 0 }
  0x11   : > { %p1351_p9 = scmp.ge.s32.totalorder %s1658_s17, 1  ;;  %p120_p10 = scmp.lt.s32.totalorder %s1658_s17, 5 }
  0x12   : > { %p1748_p11 = por %p107_p7, %p35_p0  ;;  %p1752_p12 = por %p113_p8, %p41_p3 }
  0x13   : > { %p1756_p13 = pnand %p1351_p9, %p120_p10  ;;  %s133_s30 = sshll.u32 %s3280_s1, 4  ;;  %s134_s30 = int_to_ptr.vmem [resolvable:$true] %s133_s30 }
  0x14   : > { %s3295_s25 = scalar_select %p1748_p11, 1, 0 }
  0x15   : > { %s3296_s26 = scalar_select %p1752_p12, 1, 0 }
  0x16   : > { %p1444_p1 = pneg %p1756_p13  ;;  %p1457_p0 = scmp.lt.s32.totalorder %s1658_s17, 4 }
  0x17   : > { %s147_s5 = sand.u32 1, %s1654_s16   ;;  %s1539_s8 = scalar_lea.vmem %s134_s30, 16 }
  0x18   : > { %p1768_p2 = pnand %p1444_p1, %p3284_p4  ;;  %p1775_p3 = pnand %p1457_p0, %p1735_p5 }
  0x19   : > { %s1354_s7 = sshll.u32 %s147_s5, 9  ;;  %p1540_p7 = scmp.ne.s32.totalorder %s134_s30, %s1539_s8 }
  0x1a   : > { %p1541_p8 = pneg %p1768_p2  ;;  %p1547_p12 = scmp.lt.s32.totalorder %s134_s30, %s134_s30 }
  0x1b   : > { %p1548_p11 = scmp.lt.s32.totalorder %s1539_s8, %s1539_s8 }
  0x1c   : > { %p1542_p9 = pnand %p1541_p8, %p1540_p7 }
  0x1d   : > { %p1549_p1 = por %p1548_p11, %p1547_p12 }
  0x1e   : > { %p1543_p10 = pneg %p1542_p9 }
  0x20   : > { %p1550_p4 = pnand %p1549_p1, %p1543_p10 }
  0x22   : > { %1553 = shalt.err (!%p1550_p4)
}
  0x23   : > { %s1664_s9 = smov [#allocation7]   ;;  %s1433_s10 = sshll.u32 %s1658_s17, 13 }
  0x24   : > { %1447 = dma.vmem_to_smem (!%p1768_p2), %s134_s30, 16, %s1664_s9, [#allocation6]  }
  0x25   : > { %s151_s11 = scalar_lea.vmem [#allocation3], %s1354_s7  ;;  %s1787_s20 = scalar_lea.hbm %s3279_s0, %s1433_s10 }
  0x26   : > { %s159_s12 = sshll.u32 %s151_s11, 4  ;;  %s1791_s21 = scalar_lea.sflag [#allocation4], %s147_s5  ;;  %s1789_s12 = int_to_ptr.vmem [resolvable:$true] %s159_s12 }
  0x27   : > { %s1554_s23 = scalar_lea.hbm %s1787_s20, 8192  ;;  %p1556_p5 = pneg %p1775_p3 }
  0x28   : > { %p1555_p4 = scmp.ne.s32.totalorder %s1787_s20, %s1554_s23  ;;  %s1559_s30 = scalar_lea.hbm %s3279_s0, 32768 }
  0x29   : > { %p1560_p0 = scmp.lt.u32.totalorder %s1787_s20, %s3279_s0  ;;  %p1561_p2 = scmp.lt.u32.totalorder %s1559_s30, %s1554_s23 }
  0x2a   : > { %p1557_p11 = pnand %p1556_p5, %p1555_p4  ;;  %p1563_p8 = scmp.lt.u32.totalorder %s1554_s23, %s1787_s20 }
  0x2b   : > { %p1562_p7 = por %p1561_p2, %p1560_p0 }
  0x2c   : > { %p1558_p12 = pneg %p1557_p11 }
  0x2d   : > { %p1564_p9 = por %p1563_p8, %p1562_p7 }
  0x2f   : > { %p1565_p10 = pnand %p1564_p9, %p1558_p12 }
  0x31   : > { %1568 = shalt.err (!%p1565_p10)
}
  0x32   : > { %s1569_s5 = scalar_lea.vmem %s1789_s12, 8192  ;;  %s1665_s8 = smov [#allocation3]  }
  0x33   : > { %p1570_p1 = scmp.ne.s32.totalorder %s1789_s12, %s1569_s5  ;;  %s1574_s9 = sshll.u32 %s1665_s8, 4  ;;  %s1575_s9 = int_to_ptr.vmem [resolvable:$false] %s1574_s9 }
  0x34   : > { %s1576_s10 = scalar_lea.vmem %s1575_s9, 16384  ;;  %p1577_p6 = scmp.lt.s32.totalorder %s1789_s12, %s1575_s9 }
  0x35   : > { %p1572_p4 = pnand %p1570_p1, %p1556_p5  ;;  %p1578_p0 = scmp.lt.s32.totalorder %s1576_s10, %s1569_s5 }
  0x37   : > { %p1573_p11 = pneg %p1572_p4  ;;  %p1579_p2 = por %p1578_p0, %p1577_p6 }
  0x39   : > { %p1580_p7 = pnand %p1579_p2, %p1573_p11 }
  0x3b   : > { %1583 = shalt.err (!%p1580_p7)
}
  0x3c   : > { %s1666_s11 = smov 128   ;;  %s1667_s13 = smov 8  }
  0x3d   : > { %1451 = dma.hbm_to_vmem [thread:$0]  (!%p1775_p3), %s1787_s20, 8192, %s1789_s12, %s1791_s21, %s1666_s11, %s1666_s11, %s1667_s13  }
  0x3e   : > { %171 = sbr.rel (%p1756_p13) target bundleno = 340 (0x154), region = 32 }
  0x45   : > { %s1822_s18 = sand.u32 1, %s1650_s15   ;;  %p3300_p6 = scmp.ne.s32.totalorder %s3294_s24, 0 }
  0x46   : > { %s1359_s23 = sshll.u32 %s1822_s18, 9  ;;  %s174_s28 = scalar_lea.sflag [#allocation4], %s1822_s18 }
  0x47   : > { %s1826_s29 = scalar_lea.vmem [#allocation3], %s1359_s23 }
  0x48   : > { %1633 = dma.done.wait (%p3300_p6), %s174_s28, 8192  }
  0x49   : > { %1635 = vsyncadd (%p3300_p6), %s174_s28, 4294959104  ;;  %p3301_p3 = scmp.eq.s32.totalorder %s1717_s2, 0 }
  0x4b   : > { %1637 = dma.done.wait (%p3301_p3), [#allocation6], 16   ;;  %p3302_p13 = pmov %p3301_p3 }
  0x4d   : > { %1639 = vsyncadd (%p3302_p13), [#allocation6], 4294967280 }
  0x4e   : > { %186 = sfence }
  0x4f   : > { %s1361_s27 = sshll.u32 %s1822_s18, 7  ;;  %v207_v0 = vlaneseq  ;;  %s1837_s6 = sld [smem:[#allocation2]] }
  0x50   : > { %s1850_s24 = scalar_lea.vmem [#allocation8], %s1361_s27  ;;  %s1852_s12 = smov 0  }
  0x51   : > { %v1839_v1 = vshrl.u32 %v207_v0, 7  ;;  %v1841_v2 = vand.u32 127, %v207_v0 }
  0x53   : > { %v1844_v3 = vadd.s32 56, %v1839_v1  ;;  %vm218_vm0 = vcmp.ge.s32.totalorder %v1839_v1, 1  ;;  %vm234_vm1 = vcmp.ge.s32.totalorder %v1841_v2, 1  ;;  %vm235_vm2 = vcmp.le.s32.totalorder %v1841_v2, 126 }
  0x55   : > { %3303 = vst [vmem:[#allocation12_spill] sm:$0xff] %v1844_v3  ;;  %vm233_vm3 = vcmp.le.s32.totalorder %v1844_v3, 62 }
  0x56 LB: >> { %s283_s20 = sld [smem:[#allocation7]]  ;;  %s1390_s21 = sld [smem:[#allocation7 + $0x1]]  ;;  %vm355_vm4 = vcmp.lt.s32.totalorder %v1839_v1, 1  ;;  %vm948_vm5 = vcmp.lt.s32.totalorder %v1839_v1, 7  ;;  %vm2779_vm6 = vmand %vm218_vm0, %vm234_vm1  ;;  %s1662_s12 = sphi %s1852_s12, %s242_s12  }
  0x57   : >> { %s1362_s30 = sshll.u32 %s1662_s12, 8  ;;  %s1391_s4 = sld [smem:[#allocation7 + $0x2]]  ;;  %vm2969_vm7 = vmand %vm218_vm0, %vm235_vm2 }
  0x58   : >> { %s1859_s7 = scalar_lea.vmem %s1826_s29, %s1362_s30 [#allocation3]  ;;  %s1392_s5 = sld [smem:[#allocation7 + $0x3]]  ;;  %vm3167_vm8 = vmand %vm233_vm3, %vm234_vm1 }
  0x59   : >> { %v1862_v4 = vld [vmem:[%s1859_s7 + $0x8] sm:$0xff]  ;;  %v1865_v5 = vld [vmem:[%s1859_s7 + $0x10] sm:$0xff]  ;;  %v1885_v12 = vld [vmem:[%s1859_s7] sm:$0xff]  ;;  %s1982_s8 = sld [smem:[#allocation7 + $0x8]]  ;;  %s1996_s9 = sld [smem:[#allocation7 + $0x9]] }
  0x5a   : >> { %v1868_v6 = vld [vmem:[%s1859_s7 + $0x48] sm:$0xff]  ;;  %v1871_v7 = vld [vmem:[%s1859_s7 + $0x50] sm:$0xff]  ;;  %v1898_v17 = vld [vmem:[%s1859_s7 + $0x38] sm:$0xff]  ;;  %s1998_s10 = sld [smem:[#allocation7 + $0xa]]  ;;  %s2022_s11 = sld [smem:[#allocation7 + $0xb]] }
  0x5b   : >> { %v1874_v8 = vld [vmem:[%s1859_s7 + $0x88] sm:$0xff]  ;;  %v1877_v9 = vld [vmem:[%s1859_s7 + $0x90] sm:$0xff]  ;;  %v1901_v18 = vld [vmem:[%s1859_s7 + $0x40] sm:$0xff]  ;;  %s1668_s13 = smov 1   ;;  %s2114_s23 = sld [smem:[#allocation7 + $0xc]] }
  0x5c   : >> { %v1880_v10 = vld [vmem:[%s1859_s7 + $0xc8] sm:$0xff]  ;;  %v1882_v11 = vstv %s283_s20  ;;  %v1888_v13 = vld [vmem:[%s1859_s7 + $0xd0] sm:$0xff]  ;;  %v1894_v16 = vstv %s1390_s21  ;;  %s2129_s28 = sld [smem:[#allocation7 + $0xd]]  ;;  %s2131_s27 = sld [smem:[#allocation7 + $0xe]]  ;;  %vm1196_vm9 = vmand %vm233_vm3, %vm235_vm2 }
  0x5d   : >> { %v286_v14 = vmul.f32 %v1882_v11, %v1862_v4  ;;  %v287_v15 = vmul.f32 %v1882_v11, %v1865_v5  ;;  %v285_v19 = vmul.f32 %v1882_v11, %v1885_v12  ;;  %v296_v20 = vmul.f32 %v1868_v6, %v1894_v16  ;;  %v1912_v23 = vld [vmem:[%s1859_s7 + $0x78] sm:$0xff]  ;;  %v1915_v24 = vld [vmem:[%s1859_s7 + $0x80] sm:$0xff]  ;;  %v1970_v54 = vld [vmem:[%s1859_s7 + $0x28] sm:$0xff]  ;;  %s1669_s20 = smov 127   ;;  %s2137_s21 = sld [smem:[#allocation7 + $0xf]] }
  0x5e   : >> { %v297_v21 = vmul.f32 %v1871_v7, %v1894_v16  ;;  %v1909_v22 = vstv %s1391_s4  ;;  %v1918_v25 = vld [vmem:[%s1859_s7 + $0xb8] sm:$0xff]  ;;  %v292_v26 = vmul.f32 %v1882_v11, %v1898_v17  ;;  %v1926_v29 = vstv %s1392_s5  ;;  %v1929_v30 = vld [vmem:[%s1859_s7 + $0xc0] sm:$0xff]  ;;  %s2175_s30 = sld [smem:[#allocation7 + $0x14]]  ;;  %s2204_s4 = sld [smem:[#allocation7 + $0x15]] }
  0x5f   : >> { %v314_v27 = vmul.f32 %v1874_v8, %v1909_v22  ;;  %v315_v28 = vmul.f32 %v1877_v9, %v1909_v22  ;;  %v1932_v31 = vld [vmem:[%s1859_s7 + $0xf8] sm:$0xff]  ;;  %v295_v32 = vmul.f32 %v1901_v18, %v1894_v16  ;;  %v304_v33 = vadd.f32 %v296_v20, %v286_v14  ;;  %v1963_v49 = vld [vmem:[%s1859_s7 + $0x20] sm:$0xff]  ;;  %v1980_v60 = vld [vmem:[%s1859_s7 + $0x68] sm:$0xff]  ;;  %s2229_s5 = sld [smem:[#allocation7 + $0x16]] }
  0x60   : >> { %v305_v34 = vadd.f32 %v297_v21, %v287_v15  ;;  %v332_v35 = vmul.f32 %v1880_v10, %v1926_v29  ;;  %v333_v36 = vmul.f32 %v1888_v13, %v1926_v29  ;;  %v1941_v37 = vld [vmem:[%s1859_s7 + $0x18] sm:$0xff]  ;;  %v302_v39 = vmul.f32 %v1912_v23, %v1894_v16  ;;  %v1973_v55 = vld [vmem:[%s1859_s7 + $0x60] sm:$0xff]  ;;  %v1988_v14 = vld [vmem:[%s1859_s7 + $0xa8] sm:$0xff] }
  0x61   : >> { %v1944_v38 = vld [vmem:[%s1859_s7 + $0x58] sm:$0xff]  ;;  %v303_v40 = vadd.f32 %v295_v32, %v285_v19  ;;  %v313_v41 = vmul.f32 %v1915_v24, %v1909_v22  ;;  %v320_v42 = vmul.f32 %v1918_v25, %v1909_v22  ;;  %v322_v45 = vadd.f32 %v314_v27, %v304_v33  ;;  %v1985_v0 = vld [vmem:[%s1859_s7 + $0xa0] sm:$0xff] }
  0x62   : >> { %v1953_v43 = vld [vmem:[%s1859_s7 + $0x98] sm:$0xff]  ;;  %v323_v46 = vadd.f32 %v315_v28, %v305_v34  ;;  %v331_v47 = vmul.f32 %v1929_v30, %v1926_v29  ;;  %v338_v48 = vmul.f32 %v1932_v31, %v1926_v29  ;;  %v310_v50 = vadd.f32 %v302_v39, %v292_v26  ;;  %v2003_v33 = vld [vmem:[%s1859_s7 + $0xe0] sm:$0xff]  ;;  %v2006_v34 = vld [vmem:[%s1859_s7 + $0xe8] sm:$0xff] }
  0x63   : >> { %v1956_v44 = vld [vmem:[%s1859_s7 + $0xd8] sm:$0xff]  ;;  %v321_v51 = vadd.f32 %v313_v41, %v303_v40  ;;  %v288_v52 = vmul.f32 %v1882_v11, %v1941_v37  ;;  %v298_v53 = vmul.f32 %v1944_v38, %v1894_v16  ;;  %v340_v56 = vadd.f32 %v332_v35, %v322_v45  ;;  %v2020_v45 = vld [vmem:[%s1859_s7 + $0x70] sm:$0xff] }
  0x64   : >> { %v341_v57 = vadd.f32 %v333_v36, %v323_v46  ;;  %v316_v58 = vmul.f32 %v1953_v43, %v1909_v22  ;;  %v334_v59 = vmul.f32 %v1956_v44, %v1926_v29  ;;  %v328_v61 = vadd.f32 %v320_v42, %v310_v50  ;;  %v2011_v36 = vld [vmem:[%s1859_s7 + $0x30] sm:$0xff] }
  0x65   : >> { %v339_v62 = vadd.f32 %v331_v47, %v321_v51  ;;  %v306_v63 = vadd.f32 %v298_v53, %v288_v52  ;;  %v289_v15 = vmul.f32 %v1882_v11, %v1963_v49  ;;  %v348_v19 = vrot.slane %v340_v56, 7  ;;  %v2029_v51 = vld [vmem:[%s1859_s7 + $0xb0] sm:$0xff] }
  0x66   : >> { %v349_v20 = vrot.slane %v341_v57, 7  ;;  %v290_v21 = vmul.f32 %v1882_v11, %v1970_v54  ;;  %v299_v26 = vmul.f32 %v1973_v55, %v1894_v16  ;;  %v2000_v27 = vadd.f32 %v338_v48, %v328_v61  ;;  %v2032_v52 = vld [vmem:[%s1859_s7 + $0xf0] sm:$0xff] }
  0x67   : >> { %v347_v28 = vrot.slane %v339_v62, 7  ;;  %v324_v32 = vadd.f32 %v316_v58, %v306_v63  ;;  %v300_v35 = vmul.f32 %v1980_v60, %v1894_v16  ;;  %v317_v41 = vmul.f32 %v1985_v0, %v1909_v22 }
  0x68   : >> { %v361_v39 = vsel %vm355_vm4, %v348_v19, %v349_v20  ;;  %v307_v40 = vadd.f32 %v299_v26, %v289_v15  ;;  %v318_v42 = vmul.f32 %v1988_v14, %v1909_v22  ;;  %v354_v46 = vrot.slane %v2000_v27, 7 }
  0x69   : >> { %368 = vrot.lane.b32.xlu1 %v361_v39, %s1668_s13  ;;  %v342_v47 = vadd.f32 %v334_v59, %v324_v32  ;;  %v362_v48 = vsel %vm355_vm4, %v347_v28, %v348_v19  ;;  %v308_v50 = vadd.f32 %v300_v35, %v290_v21  ;;  %v335_v56 = vmul.f32 %v2003_v33, %v1926_v29 }
  0x6a   : >> { %v325_v53 = vadd.f32 %v317_v41, %v307_v40  ;;  %v336_v57 = vmul.f32 %v2006_v34, %v1926_v29  ;;  %v291_v58 = vmul.f32 %v1882_v11, %v2011_v36  ;;  %v363_v59 = vsel %vm355_vm4, %v354_v46, %v347_v28 }
  0x6b   : >> { %v350_v61 = vrot.slane %v342_v47, 7  ;;  %v326_v62 = vadd.f32 %v318_v42, %v308_v50  ;;  %v301_v63 = vmul.f32 %v2020_v45, %v1894_v16  ;;  %364 = vrot.lane.b32.xlu0 %v363_v59, %s1668_s13  ;;  %v319_v19 = vmul.f32 %v2029_v51, %v1909_v22 }
  0x6c   : >> { %v343_v15 = vadd.f32 %v335_v56, %v325_v53  ;;  %v337_v21 = vmul.f32 %v2032_v52, %v1926_v29  ;;  %v2050_v11 = vstv %s1982_s8  ;;  %v2060_v35 = vstv %s1996_s9  ;;  %s2235_s8 = sld [smem:[#allocation7 + $0x17]]  ;;  %s2256_s9 = sld [smem:[#allocation7 + $0x18]] }
  0x6d   : >> { %v360_v26 = vsel %vm355_vm4, %v349_v20, %v350_v61  ;;  %v344_v27 = vadd.f32 %v336_v57, %v326_v62  ;;  %v309_v28 = vadd.f32 %v301_v63, %v291_v58  ;;  %v494_v16 = vmul.f32 %v2050_v11, %v1885_v12 }
  0x6e   : >> { %370 = vrot.lane.b32.xlu1 %v360_v26, %s1668_s13  ;;  %v351_v32 = vrot.slane %v343_v15, 7  ;;  %v495_v22 = vmul.f32 %v2050_v11, %v1862_v4  ;;  %v2063_v29 = vstv %s1998_s10  ;;  %v504_v20 = vmul.f32 %v1901_v18, %v2060_v35  ;;  %s2277_s10 = sld [smem:[#allocation7 + $0x19]] }
  0x6f   : >> { %v352_v39 = vrot.slane %v344_v27, 7  ;;  %v327_v40 = vadd.f32 %v319_v19, %v309_v28  ;;  %v505_v41 = vmul.f32 %v1868_v6, %v2060_v35  ;;  %366 = vrot.lane.b32.xlu0 %v362_v48, %s1668_s13  ;;  %v522_v47 = vmul.f32 %v1915_v24, %v2063_v29 }
  0x70   : >> { %v359_v42 = vsel %vm355_vm4, %v350_v61, %v351_v32  ;;  %v523_v50 = vmul.f32 %v1874_v8, %v2063_v29  ;;  %v2077_v53 = vstv %s2022_s11  ;;  %v512_v58 = vadd.f32 %v504_v20, %v494_v16  ;;  %s2301_s11 = sld [smem:[#allocation7 + $0x1a]] }
  0x71   : >> { %v358_v56 = vsel %vm355_vm4, %v351_v32, %v352_v39  ;;  %v345_v57 = vadd.f32 %v337_v21, %v327_v40  ;;  %v513_v59 = vadd.f32 %v505_v41, %v495_v22  ;;  %v540_v48 = vmul.f32 %v1929_v30, %v2077_v53 }
  0x72   : >> { %374 = vrot.lane.b32.xlu1 %v358_v56, %s1668_s13  ;;  %v541_v61 = vmul.f32 %v1880_v10, %v2077_v53  ;;  %v501_v62 = vmul.f32 %v2050_v11, %v1898_v17  ;;  %v511_v63 = vmul.f32 %v1912_v23, %v2060_v35  ;;  %v530_v19 = vadd.f32 %v522_v47, %v512_v58 }
  0x73   : >> { %v353_v15 = vrot.slane %v345_v57, 7  ;;  %v531_v26 = vadd.f32 %v523_v50, %v513_v59  ;;  %v529_v21 = vmul.f32 %v1918_v25, %v2063_v29  ;;  %372 = vrot.lane.b32.xlu0 %v359_v42, %s1668_s13  ;;  %v547_v28 = vmul.f32 %v1932_v31, %v2077_v53 }
  0x74   : >> { %v519_v27 = vadd.f32 %v511_v63, %v501_v62  ;;  %v496_v16 = vmul.f32 %v2050_v11, %v1865_v5  ;;  %v497_v32 = vmul.f32 %v2050_v11, %v1941_v37  ;;  %v548_v20 = vadd.f32 %v540_v48, %v530_v19 }
  0x75   : >> { %v356_v22 = vsel %vm355_vm4, %v353_v15, %v354_v46  ;;  %v357_v40 = vsel %vm355_vm4, %v352_v39, %v353_v15  ;;  %v549_v41 = vadd.f32 %v541_v61, %v531_v26  ;;  %v506_v47 = vmul.f32 %v1871_v7, %v2060_v35 }
  0x76   : >> { %378 = vrot.lane.b32.xlu1 %v356_v22, %s1668_s13  ;;  %v537_v42 = vadd.f32 %v529_v21, %v519_v27  ;;  %v507_v50 = vmul.f32 %v1944_v38, %v2060_v35  ;;  %v524_v56 = vmul.f32 %v1877_v9, %v2063_v29  ;;  %v556_v57 = vrot.slane %v548_v20, 7 }
  0x77   : >> { %v557_v58 = vrot.slane %v549_v41, 7  ;;  %v525_v46 = vmul.f32 %v1953_v43, %v2063_v29  ;;  %v542_v39 = vmul.f32 %v1888_v13, %v2077_v53  ;;  %376 = vrot.lane.b32.xlu0 %v357_v40, %s1668_s13  ;;  %v514_v48 = vadd.f32 %v506_v47, %v496_v16 }
  0x78   : >> { %v2117_v59 = vadd.f32 %v547_v28, %v537_v42  ;;  %v515_v61 = vadd.f32 %v507_v50, %v497_v32  ;;  %v543_v62 = vmul.f32 %v1956_v44, %v2077_v53  ;;  %v498_v15 = vmul.f32 %v2050_v11, %v1963_v49 }
  0x79   : >> { %v570_v63 = vsel %vm355_vm4, %v556_v57, %v557_v58  ;;  %v499_v19 = vmul.f32 %v2050_v11, %v1970_v54  ;;  %v508_v26 = vmul.f32 %v1973_v55, %v2060_v35  ;;  %v532_v27 = vadd.f32 %v524_v56, %v514_v48 }
  0x7a   : >> { %574 = vrot.lane.b32.xlu1 %v570_v63, %s1669_s20  ;;  %v563_v21 = vrot.slane %v2117_v59, 7  ;;  %v533_v28 = vadd.f32 %v525_v46, %v515_v61  ;;  %v509_v16 = vmul.f32 %v1980_v60, %v2060_v35  ;;  %v526_v22 = vmul.f32 %v1985_v0, %v2063_v29 }
  0x7b   : >> { %v516_v32 = vadd.f32 %v508_v26, %v498_v15  ;;  %v527_v40 = vmul.f32 %v1988_v14, %v2063_v29  ;;  %v544_v20 = vmul.f32 %v2003_v33, %v2077_v53  ;;  %v550_v42 = vadd.f32 %v542_v39, %v532_v27 }
  0x7c   : >> { %v571_v41 = vsel %vm355_vm4, %v563_v21, %v556_v57  ;;  %v551_v47 = vadd.f32 %v543_v62, %v533_v28  ;;  %v517_v50 = vadd.f32 %v509_v16, %v499_v19  ;;  %v545_v46 = vmul.f32 %v2006_v34, %v2077_v53 }
  0x7d   : >> { %572 = vrot.lane.b32.xlu0 %v571_v41, %s1669_s20  ;;  %v534_v56 = vadd.f32 %v526_v22, %v516_v32  ;;  %v500_v59 = vmul.f32 %v2050_v11, %v2011_v36  ;;  %v510_v48 = vmul.f32 %v2020_v45, %v2060_v35  ;;  %v558_v61 = vrot.slane %v550_v42, 7 }
  0x7e   : >> { %v559_v63 = vrot.slane %v551_v47, 7  ;;  %v535_v57 = vadd.f32 %v527_v40, %v517_v50  ;;  %v528_v39 = vmul.f32 %v2029_v51, %v2063_v29  ;;  %v546_v19 = vmul.f32 %v2032_v52, %v2077_v53 }
  0x7f   : >> { %v552_v62 = vadd.f32 %v544_v20, %v534_v56  ;;  %v518_v15 = vadd.f32 %v510_v48, %v500_v59  ;;  %v2159_v26 = vstv %s2114_s23  ;;  %v569_v35 = vsel %vm355_vm4, %v557_v58, %v558_v61  ;;  %s2322_s23 = sld [smem:[#allocation7 + $0x1b]] }
  0x80   : >> { %v568_v11 = vsel %vm355_vm4, %v558_v61, %v559_v63  ;;  %v553_v27 = vadd.f32 %v545_v46, %v535_v57  ;;  %v615_v28 = vmul.f32 %v2159_v26, %v1862_v4  ;;  %v2170_v53 = vstv %s2129_s28  ;;  %s2345_s28 = sld [smem:[#allocation7 + $0x20]] }
  0x81   : >> { %578 = vrot.lane.b32.xlu1 %v568_v11, %s1669_s20  ;;  %576 = vrot.lane.b32.xlu0 %v569_v35, %s1669_s20  ;;  %v560_v29 = vrot.slane %v552_v62, 7  ;;  %v536_v16 = vadd.f32 %v528_v39, %v518_v15  ;;  %v2173_v32 = vstv %s2131_s27  ;;  %v625_v58 = vmul.f32 %v1868_v6, %v2170_v53  ;;  %s2416_s27 = sld [smem:[#allocation7 + $0x21]] }
  0x82   : >> { %v561_v22 = vrot.slane %v553_v27, 7  ;;  %v643_v40 = vmul.f32 %v1874_v8, %v2173_v32  ;;  %v2182_v20 = vstv %s2137_s21  ;;  %v614_v50 = vmul.f32 %v2159_v26, %v1885_v12  ;;  %s2418_s21 = sld [smem:[#allocation7 + $0x22]] }
  0x83   : >> { %v567_v41 = vsel %vm355_vm4, %v559_v63, %v560_v29  ;;  %v554_v42 = vadd.f32 %v546_v19, %v536_v16  ;;  %v661_v47 = vmul.f32 %v1880_v10, %v2182_v20  ;;  %v633_v46 = vadd.f32 %v625_v58, %v615_v28 }
  0x84   : >> { %v566_v56 = vsel %vm355_vm4, %v560_v29, %v561_v22  ;;  %v624_v59 = vmul.f32 %v1901_v18, %v2170_v53  ;;  %v642_v48 = vmul.f32 %v1915_v24, %v2173_v32  ;;  %v660_v63 = vmul.f32 %v1929_v30, %v2182_v20 }
  0x85   : >> { %582 = vrot.lane.b32.xlu1 %v566_v56, %s1669_s20  ;;  %580 = vrot.lane.b32.xlu0 %v567_v41, %s1669_s20  ;;  %v562_v61 = vrot.slane %v554_v42, 7  ;;  %v617_v57 = vmul.f32 %v2159_v26, %v1941_v37  ;;  %v627_v39 = vmul.f32 %v1944_v38, %v2170_v53  ;;  %v651_v62 = vadd.f32 %v643_v40, %v633_v46 }
  0x86   : >> { %v632_v15 = vadd.f32 %v624_v59, %v614_v50  ;;  %v645_v19 = vmul.f32 %v1953_v43, %v2173_v32  ;;  %v663_v11 = vmul.f32 %v1956_v44, %v2182_v20  ;;  %v616_v29 = vmul.f32 %v2159_v26, %v1865_v5 }
  0x87   : >> { %v564_v35 = vsel %vm355_vm4, %v562_v61, %v563_v21  ;;  %v565_v27 = vsel %vm355_vm4, %v561_v22, %v562_v61  ;;  %v635_v28 = vadd.f32 %v627_v39, %v617_v57  ;;  %v669_v16 = vadd.f32 %v661_v47, %v651_v62 }
  0x88   : >> { %v650_v58 = vadd.f32 %v642_v48, %v632_v15  ;;  %v626_v40 = vmul.f32 %v1871_v7, %v2170_v53  ;;  %v644_v41 = vmul.f32 %v1877_v9, %v2173_v32  ;;  %v662_v22 = vmul.f32 %v1888_v13, %v2182_v20 }
  0x89   : >> { %586 = vrot.lane.b32.xlu1 %v564_v35, %s1669_s20  ;;  %584 = vrot.lane.b32.xlu0 %v565_v27, %s1669_s20  ;;  %v653_v21 = vadd.f32 %v645_v19, %v635_v28  ;;  %v619_v42 = vmul.f32 %v2159_v26, %v1970_v54  ;;  %v2227_v50 = vstv %s2175_s30  ;;  %v629_v46 = vmul.f32 %v1980_v60, %v2170_v53  ;;  %s2429_s30 = sld [smem:[#allocation7 + $0x23]] }
  0x8a   : >> { %v668_v47 = vadd.f32 %v660_v63, %v650_v58  ;;  %v634_v56 = vadd.f32 %v626_v40, %v616_v29  ;;  %v647_v59 = vmul.f32 %v1988_v14, %v2173_v32  ;;  %v665_v61 = vmul.f32 %v2006_v34, %v2182_v20 }
  0x8b   : >> { %v671_v48 = vadd.f32 %v663_v11, %v653_v21  ;;  %v618_v57 = vmul.f32 %v2159_v26, %v1963_v49  ;;  %v628_v63 = vmul.f32 %v1973_v55, %v2170_v53  ;;  %v637_v62 = vadd.f32 %v629_v46, %v619_v42 }
  0x8c   : >> { %v652_v39 = vadd.f32 %v644_v41, %v634_v56  ;;  %v646_v15 = vmul.f32 %v1985_v0, %v2173_v32  ;;  %v664_v19 = vmul.f32 %v2003_v33, %v2182_v20  ;;  %v621_v35 = vmul.f32 %v2159_v26, %v1898_v17 }
  0x8d   : >> { %678 = vrot.lane.b32.xlu1 %v669_v16, %s1668_s13  ;;  %676 = vrot.lane.b32.xlu0 %v668_v47, %s1668_s13  ;;  %v636_v11 = vadd.f32 %v628_v63, %v618_v57  ;;  %v631_v27 = vmul.f32 %v1912_v23, %v2170_v53  ;;  %v2254_v28 = vstv %s2204_s4  ;;  %v655_v58 = vadd.f32 %v647_v59, %v637_v62  ;;  %s1394_s4 = sld [smem:[#allocation7 + $0x5]] }
  0x8e   : >> { %v670_v29 = vadd.f32 %v662_v22, %v652_v39  ;;  %v649_v40 = vmul.f32 %v1918_v25, %v2173_v32  ;;  %v667_v16 = vmul.f32 %v1932_v31, %v2182_v20  ;;  %v620_v42 = vmul.f32 %v2159_v26, %v2011_v36 }
  0x8f   : >> { %v654_v41 = vadd.f32 %v646_v15, %v636_v11  ;;  %v639_v21 = vadd.f32 %v631_v27, %v621_v35  ;;  %v630_v47 = vmul.f32 %v2020_v45, %v2170_v53  ;;  %v673_v56 = vadd.f32 %v665_v61, %v655_v58 }
  0x90   : >> { %v648_v22 = vmul.f32 %v2029_v51, %v2173_v32  ;;  %v666_v46 = vmul.f32 %v2032_v52, %v2182_v20  ;;  %v783_v59 = vmul.f32 %v2227_v50, %v1862_v4  ;;  %v2275_v39 = vstv %s2229_s5  ;;  %s1395_s5 = sld [smem:[#allocation7 + $0x6]] }
  0x91   : >> { %682 = vrot.lane.b32.xlu1 %v671_v48, %s1668_s13  ;;  %680 = vrot.lane.b32.xlu0 %v670_v29, %s1668_s13  ;;  %v672_v57 = vadd.f32 %v664_v19, %v654_v41  ;;  %v657_v63 = vadd.f32 %v649_v40, %v639_v21  ;;  %v638_v26 = vadd.f32 %v630_v47, %v620_v42  ;;  %v827_v20 = vstv %s2235_s8  ;;  %s2653_s8 = sld [smem:[#allocation7 + $0x10]] }
  0x92   : >> { %v793_v53 = vmul.f32 %v1868_v6, %v2254_v28  ;;  %v811_v32 = vmul.f32 %v1874_v8, %v2275_v39  ;;  %v782_v48 = vmul.f32 %v2227_v50, %v1885_v12  ;;  %v829_v15 = vmul.f32 %v1880_v10, %v827_v20 }
  0x93   : >> { %v675_v61 = vadd.f32 %v667_v16, %v657_v63  ;;  %v656_v62 = vadd.f32 %v648_v22, %v638_v26  ;;  %v792_v19 = vmul.f32 %v1901_v18, %v2254_v28  ;;  %v810_v35 = vmul.f32 %v1915_v24, %v2275_v39 }
  0x94   : >> { %v801_v11 = vadd.f32 %v793_v53, %v783_v59  ;;  %v828_v27 = vmul.f32 %v1929_v30, %v827_v20  ;;  %v785_v29 = vmul.f32 %v2227_v50, %v1941_v37  ;;  %v795_v16 = vmul.f32 %v1944_v38, %v2254_v28 }
  0x95   : >> { %686 = vrot.lane.b32.xlu1 %v673_v56, %s1668_s13  ;;  %684 = vrot.lane.b32.xlu0 %v672_v57, %s1668_s13  ;;  %v674_v58 = vadd.f32 %v666_v46, %v656_v62  ;;  %v800_v40 = vadd.f32 %v792_v19, %v782_v48  ;;  %v2299_v41 = vstv %s2256_s9  ;;  %v813_v42 = vmul.f32 %v1953_v43, %v2275_v39  ;;  %s2655_s9 = sld [smem:[#allocation7 + $0x11]] }
  0x96   : >> { %v819_v21 = vadd.f32 %v811_v32, %v801_v11  ;;  %v831_v47 = vmul.f32 %v1956_v44, %v827_v20  ;;  %v784_v56 = vmul.f32 %v2227_v50, %v1865_v5  ;;  %v803_v46 = vadd.f32 %v795_v16, %v785_v29 }
  0x97   : >> { %v818_v22 = vadd.f32 %v810_v35, %v800_v40  ;;  %v794_v59 = vmul.f32 %v1871_v7, %v2254_v28  ;;  %v812_v57 = vmul.f32 %v1877_v9, %v2275_v39  ;;  %v830_v26 = vmul.f32 %v1888_v13, %v827_v20 }
  0x98   : >> { %v837_v63 = vadd.f32 %v829_v15, %v819_v21  ;;  %v787_v53 = vmul.f32 %v2227_v50, %v1970_v54  ;;  %v797_v32 = vmul.f32 %v1980_v60, %v2254_v28  ;;  %v821_v62 = vadd.f32 %v813_v42, %v803_v46 }
  0x99   : >> { %690 = vrot.lane.b32.xlu1 %v675_v61, %s1668_s13  ;;  %688 = vrot.lane.b32.xlu0 %v674_v58, %s1668_s13  ;;  %v836_v48 = vadd.f32 %v828_v27, %v818_v22  ;;  %v802_v19 = vadd.f32 %v794_v59, %v784_v56  ;;  %v2320_v11 = vstv %s2277_s10  ;;  %v815_v35 = vmul.f32 %v1988_v14, %v2275_v39  ;;  %s2698_s10 = sld [smem:[#allocation7 + $0x12]] }
  0x9a   : >> { %v805_v15 = vadd.f32 %v797_v32, %v787_v53  ;;  %v833_v29 = vmul.f32 %v2006_v34, %v827_v20  ;;  %v786_v40 = vmul.f32 %v2227_v50, %v1963_v49  ;;  %v839_v61 = vadd.f32 %v831_v47, %v821_v62 }
  0x9b   : >> { %v820_v16 = vadd.f32 %v812_v57, %v802_v19  ;;  %v796_v27 = vmul.f32 %v1973_v55, %v2254_v28  ;;  %v814_v58 = vmul.f32 %v1985_v0, %v2275_v39  ;;  %v832_v42 = vmul.f32 %v2003_v33, %v827_v20 }
  0x9c   : >> { %v823_v21 = vadd.f32 %v815_v35, %v805_v15  ;;  %v789_v56 = vmul.f32 %v2227_v50, %v1898_v17  ;;  %v799_v22 = vmul.f32 %v1912_v23, %v2254_v28  ;;  %v817_v59 = vmul.f32 %v1918_v25, %v2275_v39 }
  0x9d   : >> { %846 = vrot.lane.b32.xlu1 %v837_v63, %s1669_s20  ;;  %844 = vrot.lane.b32.xlu0 %v836_v48, %s1669_s20  ;;  %v838_v47 = vadd.f32 %v830_v26, %v820_v16  ;;  %v804_v46 = vadd.f32 %v796_v27, %v786_v40  ;;  %v2343_v57 = vstv %s2301_s11  ;;  %v835_v62 = vmul.f32 %v1932_v31, %v827_v20  ;;  %s2709_s11 = sld [smem:[#allocation7 + $0x13]] }
  0x9e   : >> { %v841_v53 = vadd.f32 %v833_v29, %v823_v21  ;;  %v807_v32 = vadd.f32 %v799_v22, %v789_v56  ;;  %v788_v19 = vmul.f32 %v2227_v50, %v2011_v36  ;;  %v798_v26 = vmul.f32 %v2020_v45, %v2254_v28 }
  0x9f   : >> { %v822_v63 = vadd.f32 %v814_v58, %v804_v46  ;;  %v816_v48 = vmul.f32 %v2029_v51, %v2275_v39  ;;  %v834_v15 = vmul.f32 %v2032_v52, %v827_v20  ;;  %v879_v29 = vmul.f32 %v2299_v41, %v1862_v4 }
  0xa0   : >> { %v825_v35 = vadd.f32 %v817_v59, %v807_v32  ;;  %v880_v40 = vmul.f32 %v2299_v41, %v1865_v5  ;;  %v889_v16 = vmul.f32 %v1868_v6, %v2320_v11  ;;  %v806_v28 = vadd.f32 %v798_v26, %v788_v19 }
  0xa1   : >> { %850 = vrot.lane.b32.xlu1 %v839_v61, %s1669_s20  ;;  %848 = vrot.lane.b32.xlu0 %v838_v47, %s1669_s20  ;;  %v840_v50 = vadd.f32 %v832_v42, %v822_v63  ;;  %v890_v39 = vmul.f32 %v1871_v7, %v2320_v11  ;;  %v2367_v20 = vstv %s2322_s23  ;;  %v907_v21 = vmul.f32 %v1874_v8, %v2343_v57  ;;  %s2796_s23 = sld [smem:[#allocation7 + $0x1c]] }
  0xa2   : >> { %v843_v27 = vadd.f32 %v835_v62, %v825_v35  ;;  %v897_v58 = vadd.f32 %v889_v16, %v879_v29  ;;  %v908_v56 = vmul.f32 %v1877_v9, %v2343_v57  ;;  %v824_v22 = vadd.f32 %v816_v48, %v806_v28 }
  0xa3   : >> { %v898_v61 = vadd.f32 %v890_v39, %v880_v40  ;;  %v925_v42 = vmul.f32 %v1880_v10, %v2367_v20  ;;  %v926_v47 = vmul.f32 %v1888_v13, %v2367_v20  ;;  %v878_v59 = vmul.f32 %v2299_v41, %v1885_v12 }
  0xa4   : >> { %v915_v46 = vadd.f32 %v907_v21, %v897_v58  ;;  %v888_v32 = vmul.f32 %v1901_v18, %v2320_v11  ;;  %v906_v62 = vmul.f32 %v1915_v24, %v2343_v57  ;;  %v842_v19 = vadd.f32 %v834_v15, %v824_v22 }
  0xa5   : >> { %854 = vrot.lane.b32.xlu1 %v841_v53, %s1669_s20  ;;  %852 = vrot.lane.b32.xlu0 %v840_v50, %s1669_s20  ;;  %v916_v63 = vadd.f32 %v908_v56, %v898_v61  ;;  %v924_v26 = vmul.f32 %v1929_v30, %v2367_v20  ;;  %v2388_v48 = vstv %s2345_s28  ;;  %v881_v40 = vmul.f32 %v2299_v41, %v1941_v37  ;;  %s2806_s28 = sld [smem:[#allocation7 + $0x1d]] }
  0xa6   : >> { %v933_v35 = vadd.f32 %v925_v42, %v915_v46  ;;  %v896_v29 = vadd.f32 %v888_v32, %v878_v59  ;;  %v882_v16 = vmul.f32 %v2299_v41, %v1963_v49  ;;  %v891_v53 = vmul.f32 %v1944_v38, %v2320_v11 }
  0xa7   : >> { %v934_v28 = vadd.f32 %v926_v47, %v916_v63  ;;  %v892_v15 = vmul.f32 %v1973_v55, %v2320_v11  ;;  %v909_v50 = vmul.f32 %v1953_v43, %v2343_v57  ;;  %v910_v21 = vmul.f32 %v1985_v0, %v2343_v57 }
  0xa8   : >> { %v941_v39 = vrot.slane %v933_v35, 1  ;;  %v914_v58 = vadd.f32 %v906_v62, %v896_v29  ;;  %v927_v56 = vmul.f32 %v1956_v44, %v2367_v20  ;;  %v899_v61 = vadd.f32 %v891_v53, %v881_v40 }
  0xa9   : >> { %858 = vrot.lane.b32.xlu1 %v843_v27, %s1669_s20  ;;  %856 = vrot.lane.b32.xlu0 %v842_v19, %s1669_s20  ;;  %v942_v22 = vrot.slane %v934_v28, 1  ;;  %v900_v42 = vadd.f32 %v892_v15, %v882_v16  ;;  %v928_v47 = vmul.f32 %v2003_v33, %v2367_v20  ;;  %v883_v59 = vmul.f32 %v2299_v41, %v1970_v54 }
  0xaa   : >> { %v2408_v46 = vadd.f32 %v924_v26, %v914_v58  ;;  %v884_v32 = vmul.f32 %v2299_v41, %v2011_v36  ;;  %v893_v62 = vmul.f32 %v1980_v60, %v2320_v11  ;;  %v917_v19 = vadd.f32 %v909_v50, %v899_v61 }
  0xab   : >> { %v954_v27 = vsel %vm948_vm5, %v941_v39, %v942_v22  ;;  %v918_v63 = vadd.f32 %v910_v21, %v900_v42  ;;  %v894_v26 = vmul.f32 %v2020_v45, %v2320_v11  ;;  %v911_v40 = vmul.f32 %v1988_v14, %v2343_v57 }
  0xac   : >> { %v940_v35 = vrot.slane %v2408_v46, 1  ;;  %v901_v29 = vadd.f32 %v893_v62, %v883_v59  ;;  %v912_v16 = vmul.f32 %v2029_v51, %v2343_v57  ;;  %v935_v28 = vadd.f32 %v927_v56, %v917_v19 }
  0xad   : >> { %959 = vrot.lane.b32.xlu1 %v954_v27, %s1668_s13  ;;  %v936_v53 = vadd.f32 %v928_v47, %v918_v63  ;;  %v902_v15 = vadd.f32 %v894_v26, %v884_v32  ;;  %v929_v50 = vmul.f32 %v2006_v34, %v2367_v20  ;;  %v930_v61 = vmul.f32 %v2032_v52, %v2367_v20 }
  0xae   : >> { %v955_v58 = vsel %vm948_vm5, %v940_v35, %v941_v39  ;;  %v919_v21 = vadd.f32 %v911_v40, %v901_v29  ;;  %v885_v42 = vmul.f32 %v2299_v41, %v1898_v17  ;;  %v943_v46 = vrot.slane %v935_v28, 1 }
  0xaf   : >> { %957 = vrot.lane.b32.xlu0 %v955_v58, %s1668_s13  ;;  %v944_v56 = vrot.slane %v936_v53, 1  ;;  %v920_v47 = vadd.f32 %v912_v16, %v902_v15  ;;  %v895_v59 = vmul.f32 %v1912_v23, %v2320_v11  ;;  %v913_v39 = vmul.f32 %v1918_v25, %v2343_v57 }
  0xb0   : >> { %v937_v32 = vadd.f32 %v929_v50, %v919_v21  ;;  %v931_v62 = vmul.f32 %v1932_v31, %v2367_v20  ;;  %v1096_v41 = vmul.f32 %v2388_v48, %v1862_v4  ;;  %v953_v19 = vsel %vm948_vm5, %v942_v22, %v943_v46 }
  0xb1   : >> { %v952_v27 = vsel %vm948_vm5, %v943_v46, %v944_v56  ;;  %v938_v63 = vadd.f32 %v930_v61, %v920_v47  ;;  %v903_v26 = vadd.f32 %v895_v59, %v885_v42  ;;  %v1097_v57 = vmul.f32 %v2388_v48, %v1865_v5 }
  0xb2   : >> { %963 = vrot.lane.b32.xlu1 %v952_v27, %s1668_s13  ;;  %v945_v11 = vrot.slane %v937_v32, 1  ;;  %v2457_v29 = vstv %s2416_s27  ;;  %v2460_v20 = vstv %s2418_s21  ;;  %v2474_v15 = vstv %s2429_s30  ;;  %s2842_s27 = sld [smem:[#allocation7 + $0x1e]]  ;;  %s2871_s21 = sld [smem:[#allocation7 + $0x1f]] }
  0xb3   : >> { %961 = vrot.lane.b32.xlu0 %v953_v19, %s1668_s13  ;;  %v946_v4 = vrot.slane %v938_v63, 1  ;;  %v921_v40 = vadd.f32 %v913_v39, %v903_v26  ;;  %v1106_v22 = vmul.f32 %v1868_v6, %v2457_v29  ;;  %v1107_v16 = vmul.f32 %v1871_v7, %v2457_v29 }
  0xb4   : >> { %v951_v28 = vsel %vm948_vm5, %v944_v56, %v945_v11  ;;  %v1124_v5 = vmul.f32 %v1874_v8, %v2460_v20  ;;  %v1125_v53 = vmul.f32 %v1877_v9, %v2460_v20  ;;  %v1142_v7 = vmul.f32 %v1880_v10, %v2474_v15 }
  0xb5   : >> { %v950_v50 = vsel %vm948_vm5, %v945_v11, %v946_v4  ;;  %v939_v58 = vadd.f32 %v931_v62, %v921_v40  ;;  %v1114_v21 = vadd.f32 %v1106_v22, %v1096_v41  ;;  %v1115_v6 = vadd.f32 %v1107_v16, %v1097_v57 }
  0xb6   : >> { %967 = vrot.lane.b32.xlu1 %v950_v50, %s1668_s13  ;;  %v1143_v61 = vmul.f32 %v1888_v13, %v2474_v15  ;;  %v1095_v8 = vmul.f32 %v2388_v48, %v1885_v12  ;;  %v1105_v9 = vmul.f32 %v1901_v18, %v2457_v29  ;;  %v1123_v47 = vmul.f32 %v1915_v24, %v2460_v20 }
  0xb7   : >> { %965 = vrot.lane.b32.xlu0 %v951_v28, %s1668_s13  ;;  %v947_v42 = vrot.slane %v939_v58, 1  ;;  %v1132_v46 = vadd.f32 %v1124_v5, %v1114_v21  ;;  %v1133_v56 = vadd.f32 %v1125_v53, %v1115_v6  ;;  %v1141_v10 = vmul.f32 %v1929_v30, %v2474_v15 }
  0xb8   : >> { %v1113_v59 = vadd.f32 %v1105_v9, %v1095_v8  ;;  %v1098_v13 = vmul.f32 %v2388_v48, %v1941_v37  ;;  %v1099_v12 = vmul.f32 %v2388_v48, %v1963_v49  ;;  %v1108_v30 = vmul.f32 %v1944_v38, %v2457_v29 }
  0xb9   : >> { %v956_v18 = vsel %vm948_vm5, %v947_v42, %v940_v35  ;;  %v949_v32 = vsel %vm948_vm5, %v946_v4, %v947_v42  ;;  %v1150_v39 = vadd.f32 %v1142_v7, %v1132_v46  ;;  %v1151_v62 = vadd.f32 %v1143_v61, %v1133_v56 }
  0xba   : >> { %971 = vrot.lane.b32.xlu1 %v956_v18, %s1668_s13  ;;  %v1131_v24 = vadd.f32 %v1123_v47, %v1113_v59  ;;  %v1109_v37 = vmul.f32 %v1973_v55, %v2457_v29  ;;  %v1126_v49 = vmul.f32 %v1953_v43, %v2460_v20  ;;  %v1127_v27 = vmul.f32 %v1985_v0, %v2460_v20 }
  0xbb   : >> { %969 = vrot.lane.b32.xlu0 %v949_v32, %s1668_s13  ;;  %v1158_v35 = vrot.slane %v1150_v39, 1  ;;  %v1159_v41 = vrot.slane %v1151_v62, 1  ;;  %v1144_v19 = vmul.f32 %v1956_v44, %v2474_v15  ;;  %v1116_v26 = vadd.f32 %v1108_v30, %v1098_v13  ;;  %s1393_s13 = sld [smem:[#allocation7 + $0x4]] }
  0xbc   : >> { %v1149_v63 = vadd.f32 %v1141_v10, %v1131_v24  ;;  %v1117_v11 = vadd.f32 %v1109_v37, %v1099_v12  ;;  %v1145_v38 = vmul.f32 %v2003_v33, %v2474_v15  ;;  %v1100_v43 = vmul.f32 %v2388_v48, %v1970_v54 }
  0xbd   : >> { %v1170_v57 = vsel %vm948_vm5, %v1158_v35, %v1159_v41  ;;  %v1101_v4 = vmul.f32 %v2388_v48, %v2011_v36  ;;  %v1110_v0 = vmul.f32 %v1980_v60, %v2457_v29  ;;  %v1134_v40 = vadd.f32 %v1126_v49, %v1116_v26 }
  0xbe   : >> { %1175 = vrot.lane.b32.xlu1 %v1170_v57, %s1669_s20  ;;  %v1157_v44 = vrot.slane %v1149_v63, 1  ;;  %v1135_v22 = vadd.f32 %v1127_v27, %v1117_v11  ;;  %v1111_v33 = vmul.f32 %v2020_v45, %v2457_v29  ;;  %v1128_v28 = vmul.f32 %v1988_v14, %v2460_v20  ;;  %v2579_v27 = vld [vmem:[%s1859_s7 + $0x38] sm:$0xff]  ;;  %v2583_v63 = vld [vmem:[%s1859_s7 + $0x40] sm:$0xff] }
  0xbf   : >> { %v1118_v16 = vadd.f32 %v1110_v0, %v1100_v43  ;;  %v1129_v5 = vmul.f32 %v2029_v51, %v2460_v20  ;;  %v1146_v53 = vmul.f32 %v2006_v34, %v2474_v15  ;;  %v1152_v58 = vadd.f32 %v1144_v19, %v1134_v40  ;;  %v2587_v11 = vld [vmem:[%s1859_s7 + $0x78] sm:$0xff]  ;;  %v2597_v0 = vld [vmem:[%s1859_s7 + $0x8] sm:$0xff]  ;;  %v2601_v40 = vld [vmem:[%s1859_s7 + $0x10] sm:$0xff] }
  0xc0   : >> { %v1171_v50 = vsel %vm948_vm5, %v1157_v44, %v1158_v35  ;;  %v1153_v21 = vadd.f32 %v1145_v38, %v1135_v22  ;;  %v1119_v6 = vadd.f32 %v1111_v33, %v1101_v4  ;;  %v1147_v61 = vmul.f32 %v2032_v52, %v2474_v15  ;;  %v2575_v35 = vld [vmem:[%s1859_s7] sm:$0xff]  ;;  %v2605_v33 = vld [vmem:[%s1859_s7 + $0x48] sm:$0xff] }
  0xc1   : >> { %1173 = vrot.lane.b32.xlu0 %v1171_v50, %s1669_s20  ;;  %v1136_v7 = vadd.f32 %v1128_v28, %v1118_v16  ;;  %v1102_v14 = vmul.f32 %v2388_v48, %v1898_v17  ;;  %v1112_v8 = vmul.f32 %v1912_v23, %v2457_v29  ;;  %v1160_v9 = vrot.slane %v1152_v58, 1  ;;  %v2609_v28 = vld [vmem:[%s1859_s7 + $0x50] sm:$0xff]  ;;  %v2613_v58 = vld [vmem:[%s1859_s7 + $0x80] sm:$0xff] }
  0xc2   : >> { %v1161_v34 = vrot.slane %v1153_v21, 1  ;;  %v1137_v42 = vadd.f32 %v1129_v5, %v1119_v6  ;;  %v1130_v46 = vmul.f32 %v1918_v25, %v2460_v20  ;;  %v1148_v59 = vmul.f32 %v1932_v31, %v2474_v15  ;;  %3304 = vst [vmem:[#allocation13_spill] sm:$0xff] %v2613_v58  ;;  %v2618_v6 = vld [vmem:[%s1859_s7 + $0xb8] sm:$0xff] }
  0xc3   : >> { %v1154_v56 = vadd.f32 %v1146_v53, %v1136_v7  ;;  %v1120_v47 = vadd.f32 %v1112_v8, %v1102_v14  ;;  %v1169_v17 = vsel %vm948_vm5, %v1159_v41, %v1160_v9  ;;  %v397_v30 = vstv %s1393_s13  ;;  %v2625_v14 = vld [vmem:[%s1859_s7 + $0x18] sm:$0xff] }
  0xc4   : >> { %v1168_v52 = vsel %vm948_vm5, %v1160_v9, %v1161_v34  ;;  %v1155_v48 = vadd.f32 %v1147_v61, %v1137_v42  ;;  %v407_v37 = vstv %s1394_s4  ;;  %v398_v41 = vmul.f32 %v2575_v35, %v397_v30  ;;  %v2629_v9 = vld [vmem:[%s1859_s7 + $0x58] sm:$0xff] }
  0xc5   : >> { %1179 = vrot.lane.b32.xlu1 %v1168_v52, %s1669_s20  ;;  %1177 = vrot.lane.b32.xlu0 %v1169_v17, %s1669_s20  ;;  %v1162_v23 = vrot.slane %v1154_v56, 1  ;;  %v1138_v29 = vadd.f32 %v1130_v46, %v1120_v47  ;;  %v405_v19 = vmul.f32 %v2579_v27, %v397_v30  ;;  %v408_v26 = vmul.f32 %v2583_v63, %v407_v37  ;;  %v2635_v46 = vld [vmem:[%s1859_s7 + $0x20] sm:$0xff] }
  0xc6   : >> { %v1163_v10 = vrot.slane %v1155_v48, 1  ;;  %v415_v38 = vmul.f32 %v2587_v11, %v407_v37  ;;  %v2592_v43 = vstv %s1395_s5  ;;  %v400_v22 = vmul.f32 %v2601_v40, %v397_v30  ;;  %3305 = vst [vmem:[#allocation14_spill] sm:$0xff] %v2629_v9 }
  0xc7   : >> { %v1167_v25 = vsel %vm948_vm5, %v1161_v34, %v1162_v23  ;;  %v1156_v20 = vadd.f32 %v1148_v59, %v1138_v29  ;;  %v409_v16 = vmul.f32 %v2605_v33, %v407_v37  ;;  %v410_v5 = vmul.f32 %v2609_v28, %v407_v37 }
  0xc8   : >> { %v1166_v31 = vsel %vm948_vm5, %v1162_v23, %v1163_v10  ;;  %v416_v53 = vadd.f32 %v408_v26, %v398_v41  ;;  %v423_v50 = vadd.f32 %v415_v38, %v405_v19  ;;  %v426_v21 = vmul.f32 %v2613_v58, %v2592_v43  ;;  %v2642_v23 = vld [vmem:[%s1859_s7 + $0x88] sm:$0xff]  ;;  %v2668_v41 = vld [vmem:[%s1859_s7 + $0x98] sm:$0xff] }
  0xc9   : >> { %1183 = vrot.lane.b32.xlu1 %v1166_v31, %s1669_s20  ;;  %1181 = vrot.lane.b32.xlu0 %v1167_v25, %s1669_s20  ;;  %v1164_v15 = vrot.slane %v1156_v20, 1  ;;  %v433_v7 = vmul.f32 %v2618_v6, %v2592_v43  ;;  %v401_v8 = vmul.f32 %v2625_v14, %v397_v30  ;;  %v411_v34 = vmul.f32 %v2629_v9, %v407_v37 }
  0xca   : >> { %v402_v56 = vmul.f32 %v2635_v46, %v397_v30  ;;  %v403_v47 = vmul.f32 %v397_v30, %v1970_v54  ;;  %v412_v59 = vmul.f32 %v1973_v55, %v407_v37  ;;  %v413_v52 = vmul.f32 %v1980_v60, %v407_v37  ;;  %v2658_v60 = vld [vmem:[%s1859_s7 + $0xc0] sm:$0xff] }
  0xcb   : >> { %v1172_v13 = vsel %vm948_vm5, %v1164_v15, %v1157_v44  ;;  %v1165_v12 = vsel %vm948_vm5, %v1163_v10, %v1164_v15  ;;  %v399_v44 = vmul.f32 %v2597_v0, %v397_v30  ;;  %v418_v48 = vadd.f32 %v410_v5, %v400_v22  ;;  %v2647_v10 = vld [vmem:[%s1859_s7 + $0x90] sm:$0xff]  ;;  %3308 = vst [vmem:[#allocation17_spill] sm:$0xff] %v2658_v60  ;;  %v2663_v15 = vld [vmem:[%s1859_s7 + $0xf8] sm:$0xff] }
  0xcc   : >> { %v427_v29 = vmul.f32 %v2642_v23, %v2592_v43  ;;  %v428_v25 = vmul.f32 %v2647_v10, %v2592_v43  ;;  %v434_v54 = vadd.f32 %v426_v21, %v416_v53  ;;  %v441_v55 = vadd.f32 %v433_v7, %v423_v50  ;;  %v2680_v53 = vld [vmem:[%s1859_s7 + $0xa8] sm:$0xff] }
  0xcd   : >> { %1187 = vrot.lane.b32.xlu1 %v1172_v13, %s1669_s20  ;;  %1185 = vrot.lane.b32.xlu0 %v1165_v12, %s1669_s20  ;;  %s1396_s20 = sld [smem:[#allocation7 + $0x7]]  ;;  %v417_v17 = vadd.f32 %v409_v16, %v399_v44  ;;  %v419_v12 = vadd.f32 %v411_v34, %v401_v8  ;;  %v429_v19 = vmul.f32 %v2668_v41, %v2592_v43  ;;  %v2675_v16 = vld [vmem:[%s1859_s7 + $0xa0] sm:$0xff]  ;;  %v2685_v21 = vld [vmem:[%s1859_s7 + $0xc8] sm:$0xff] }
  0xce   : >> { %v404_v26 = vmul.f32 %v397_v30, %v2011_v36  ;;  %v414_v38 = vmul.f32 %v2020_v45, %v407_v37  ;;  %v420_v44 = vadd.f32 %v412_v59, %v402_v56  ;;  %v421_v22 = vadd.f32 %v413_v52, %v403_v47  ;;  %v2690_v30 = vld [vmem:[%s1859_s7 + $0xd0] sm:$0xff]  ;;  %v2701_v47 = vld [vmem:[%s1859_s7 + $0xd8] sm:$0xff] }
  0xcf   : >> { %v430_v5 = vmul.f32 %v2675_v16, %v2592_v43  ;;  %v431_v50 = vmul.f32 %v2680_v53, %v2592_v43  ;;  %v435_v8 = vadd.f32 %v427_v29, %v417_v17  ;;  %v436_v34 = vadd.f32 %v428_v25, %v418_v48  ;;  %v2712_v48 = vld [vmem:[%s1859_s7 + $0xe0] sm:$0xff]  ;;  %v2717_v25 = vld [vmem:[%s1859_s7 + $0xe8] sm:$0xff] }
  0xd0   : >> { %v437_v3 = vadd.f32 %v429_v19, %v419_v12 }
  0xd1   : >> { %v439_v17 = vadd.f32 %v431_v50, %v421_v22  ;;  %v2733_v22 = vld [vmem:[%s1859_s7 + $0xf0] sm:$0xff] }
  0xd2   : >> { %3313 = vst [vmem:[#allocation22_spill] sm:$0xff] %v2733_v22 }
  0xd3   : >> { %v2622_v61 = vstv %s1396_s20 }
  0xd4   : >> { %v444_v31 = vmul.f32 %v2658_v60, %v2622_v61  ;;  %v451_v13 = vmul.f32 %v2663_v15, %v2622_v61  ;;  %v445_v36 = vmul.f32 %v2685_v21, %v2622_v61  ;;  %v446_v45 = vmul.f32 %v2690_v30, %v2622_v61 }
  0xd5   : >> { %v447_v59 = vmul.f32 %v2701_v47, %v2622_v61  ;;  %v448_v29 = vmul.f32 %v2712_v48, %v2622_v61 }
  0xd6   : >> { %v452_v56 = vadd.f32 %v444_v31, %v434_v54  ;;  %v2705_v52 = vadd.f32 %v451_v13, %v441_v55  ;;  %v449_v54 = vmul.f32 %v2717_v25, %v2622_v61  ;;  %v453_v13 = vadd.f32 %v445_v36, %v435_v8 }
  0xd7   : >> { %v454_v12 = vadd.f32 %v446_v45, %v436_v34 }
  0xd8   : >> { %v460_v19 = vrot.slane %v452_v56, 7 }
  0xdb   : >> { %v2562_v18 = vpop.permute.xlu1 %368 }
  0xdd   : >> { %v2564_v32 = vpop.permute.xlu0 %364 }
  0xe0   : >> { %v2566_v39 = vpop.permute.xlu1 %370 }
  0xe1   : >> { %v2568_v62 = vpop.permute.xlu0 %366 }
  0xe4   : >> { %v2570_v24 = vpop.permute.xlu1 %374 }
  0xe5   : >> { %v2572_v49 = vpop.permute.xlu0 %372 }
  0xe8   : >> { %v2590_v57 = vpop.permute.xlu1 %378 }
  0xe9   : >> { %v2594_v4 = vpop.permute.xlu0 %376 }
  0xec   : >> { %v2632_v42 = vpop.permute.xlu1 %574 }
  0xed   : >> { %3306 = vst [vmem:[#allocation15_spill] sm:$0xff] %v2632_v42 }
  0xef   : >> { %v2651_v20 = vpop.permute.xlu0 %572 }
  0xf0   : >> { %3307 = vst [vmem:[#allocation16_spill] sm:$0xff] %v2651_v20  ;;  %v422_v20 = vadd.f32 %v414_v38, %v404_v26  ;;  %v467_v26 = vrot.slane %v2705_v52, 7  ;;  %v455_v38 = vadd.f32 %v447_v59, %v437_v3  ;;  %v2746_v3 = vstv %s2698_s10 }
  0xf1   : >> { %v2755_v52 = vstv %s2709_s11 }
  0xf2   : >> { %v475_v34 = vsel %vm355_vm4, %v467_v26, %v460_v19  ;;  %v463_v56 = vrot.slane %v455_v38, 7 }
  0xf3   : >> { %v2694_v37 = vpop.permute.xlu1 %578  ;;  %v2696_v7 = vpop.permute.xlu0 %576 }
  0xf4   : >> { %3309 = vst [vmem:[#allocation18_spill] sm:$0xff] %v2694_v37  ;;  %3310 = vst [vmem:[#allocation19_spill] sm:$0xff] %v2696_v7  ;;  %v432_v7 = vmul.f32 %v2029_v51, %v2592_v43  ;;  %v438_v37 = vadd.f32 %v430_v5, %v420_v44  ;;  %v2726_v51 = vstv %s2653_s8  ;;  %v2729_v43 = vstv %s2655_s9 }
  0xf5   : >> { %v450_v5 = vmul.f32 %v2733_v22, %v2622_v61  ;;  %v721_v36 = vmul.f32 %v2605_v33, %v2729_v43  ;;  %v720_v61 = vmul.f32 %v2583_v63, %v2729_v43  ;;  %v723_v38 = vmul.f32 %v2629_v9, %v2729_v43 }
  0xf6   : >> { %v440_v44 = vadd.f32 %v432_v7, %v422_v20  ;;  %v456_v50 = vadd.f32 %v448_v29, %v438_v37  ;;  %v710_v20 = vmul.f32 %v2575_v35, %v2726_v51  ;;  %v461_v37 = vrot.slane %v453_v13, 7 }
  0xf7   : >> { %v2721_v55 = vpop.permute.xlu1 %582  ;;  %v2723_v31 = vpop.permute.xlu0 %580  ;;  %v462_v7 = vrot.slane %v454_v12, 7  ;;  %v738_v13 = vmul.f32 %v2613_v58, %v2746_v3  ;;  %v713_v12 = vmul.f32 %v2625_v14, %v2726_v51  ;;  %v756_v58 = vmul.f32 %v2658_v60, %v2755_v52 }
  0xf8   : >> { %3311 = vst [vmem:[#allocation20_spill] sm:$0xff] %v2721_v55  ;;  %3312 = vst [vmem:[#allocation21_spill] sm:$0xff] %v2723_v31  ;;  %v457_v31 = vadd.f32 %v449_v54, %v439_v17  ;;  %v711_v55 = vmul.f32 %v2597_v0, %v2726_v51  ;;  %v458_v59 = vadd.f32 %v450_v5, %v440_v44  ;;  %v464_v17 = vrot.slane %v456_v50, 7 }
  0xf9   : >> { %v728_v42 = vadd.f32 %v720_v61, %v710_v20  ;;  %v474_v44 = vsel %vm355_vm4, %v460_v19, %v461_v37  ;;  %v472_v50 = vsel %vm355_vm4, %v462_v7, %v463_v56  ;;  %v712_v20 = vmul.f32 %v2601_v40, %v2726_v51 }
  0xfa   : >> { %v465_v29 = vrot.slane %v457_v31, 7  ;;  %v729_v54 = vadd.f32 %v721_v36, %v711_v55  ;;  %v473_v55 = vsel %vm355_vm4, %v461_v37, %v462_v7  ;;  %v476_v31 = vsel %vm218_vm0, %v475_v34, 0.0 }
  0xfb   : >> { %v2741_v45 = vpop.permute.xlu1 %586  ;;  %v2743_v8 = vpop.permute.xlu0 %584  ;;  %v466_v36 = vrot.slane %v458_v59, 7  ;;  %v722_v61 = vmul.f32 %v2609_v28, %v2729_v43  ;;  %v390_v19 = vsel %vm234_vm1, %v2562_v18, 0.0  ;;  %v757_v7 = vmul.f32 %v2685_v21, %v2755_v52 }
  0xfc   : >> { %3314 = vst [vmem:[#allocation23_spill] sm:$0xff] %v2741_v45  ;;  %3315 = vst [vmem:[#allocation24_spill] sm:$0xff] %v2743_v8  ;;  %v739_v8 = vmul.f32 %v2642_v23, %v2746_v3  ;;  %v470_v37 = vsel %vm355_vm4, %v464_v17, %v465_v29  ;;  %v731_v9 = vadd.f32 %v723_v38, %v713_v12 }
  0xfd   : >> { %v741_v18 = vmul.f32 %v2668_v41, %v2746_v3  ;;  %v2823_v38 = vadd.f32 %v473_v55, %v390_v19  ;;  %v2836_v5 = vsel %vm355_vm4, %v465_v29, %v466_v36  ;;  %v759_v55 = vmul.f32 %v2701_v47, %v2755_v52 }
  0xfe   : >> { %v747_v34 = vadd.f32 %v739_v8, %v729_v54  ;;  %v388_v8 = vsel %vm2779_vm6, %v2564_v32, 0.0  ;;  %v471_v54 = vsel %vm355_vm4, %v463_v56, %v464_v17  ;;  %v730_v32 = vadd.f32 %v722_v61, %v712_v20 }
  0xff   : >> { %v2759_v45 = vpop.permute.xlu1 %678  ;;  %v2761_v22 = vpop.permute.xlu0 %676  ;;  %v740_v56 = vmul.f32 %v2647_v10, %v2746_v3  ;;  %v391_v17 = vsel %vm234_vm1, %v2566_v39, 0.0  ;;  %v389_v20 = vsel %vm234_vm1, %v2568_v62, 0.0 }
 0x100   : >> { %3316 = vst [vmem:[#allocation25_spill] sm:$0xff] %v2759_v45  ;;  %3317 = vst [vmem:[#allocation26_spill] sm:$0xff] %v2761_v22  ;;  %v746_v45 = vadd.f32 %v738_v13, %v728_v42  ;;  %v2819_v13 = vld [vmem:[%s1859_s7 + $0x68] sm:$0xff]  ;;  %v2838_v60 = vadd.f32 %v757_v7, %v747_v34  ;;  %v743_v34 = vmul.f32 %v2680_v53, %v2746_v3  ;;  %v2860_v7 = vld [vmem:[%s1859_s7 + $0x60] sm:$0xff] }
 0x101   : >> { %v725_v12 = vmul.f32 %v2819_v13, %v2729_v43  ;;  %v724_v62 = vmul.f32 %v2860_v7, %v2729_v43 }
 0x102   : >> { %3322 = vst [vmem:[#allocation29_spill] sm:$0xff] %v2838_v60  ;;  %v2853_v29 = vadd.f32 %v756_v58, %v746_v45  ;;  %v393_v58 = vsel %vm234_vm1, %v2570_v24, 0.0  ;;  %v758_v45 = vmul.f32 %v2690_v30, %v2755_v52 }
 0x103   : >> { %v2798_v59 = vpop.permute.xlu1 %682  ;;  %v2800_v22 = vpop.permute.xlu0 %680 }
 0x104   : >> { %3320 = vst [vmem:[#allocation27_spill] sm:$0xff] %v2798_v59  ;;  %3321 = vst [vmem:[#allocation28_spill] sm:$0xff] %v2800_v22  ;;  %v2814_v59 = vld [vmem:[%s1859_s7 + $0x28] sm:$0xff]  ;;  %v2827_v22 = vsel %vm355_vm4, %v466_v36, %v467_v26  ;;  %v2844_v26 = vadd.f32 %v476_v31, %v388_v8  ;;  %v749_v36 = vadd.f32 %v741_v18, %v731_v9 }
 0x105   : >> { %v715_v42 = vmul.f32 %v2814_v59, %v2726_v51  ;;  %3325 = vst [vmem:[#allocation32_spill] sm:$0xff] %v2853_v29  ;;  %v714_v31 = vmul.f32 %v2635_v46, %v2726_v51  ;;  %v2864_v8 = vadd.f32 %v472_v50, %v391_v17  ;;  %v748_v9 = vadd.f32 %v740_v56, %v730_v32 }
 0x106   : >> { %v485_v18 = vadd.f32 %v474_v44, %v389_v20  ;;  %v2879_v50 = vstv %s2796_s23  ;;  %v2885_v24 = vadd.f32 %v759_v55, %v749_v36  ;;  %v717_v32 = vmul.f32 %v2579_v27, %v2726_v51 }
 0x107   : >> { %v2849_v61 = vpop.permute.xlu1 %686  ;;  %v2851_v39 = vpop.permute.xlu0 %684  ;;  %v733_v19 = vadd.f32 %v725_v12, %v715_v42  ;;  %v392_v42 = vsel %vm234_vm1, %v2572_v49, 0.0  ;;  %v761_v12 = vmul.f32 %v2717_v25, %v2755_v52  ;;  %v727_v44 = vmul.f32 %v2587_v11, %v2729_v43 }
 0x108   : >> { %3323 = vst [vmem:[#allocation30_spill] sm:$0xff] %v2849_v61  ;;  %3324 = vst [vmem:[#allocation31_spill] sm:$0xff] %v2851_v39  ;;  %v2892_v56 = vstv %s2806_s28  ;;  %v2894_v49 = vadd.f32 %v470_v37, %v393_v58  ;;  %v732_v29 = vadd.f32 %v724_v62, %v714_v31  ;;  %v2900_v55 = vadd.f32 %v758_v45, %v748_v9  ;;  %v1536_v9 = vld [vmem:[%s1859_s7 + $0x30] sm:$0xff] }
 0x109   : >> { %3328 = vst [vmem:[#allocation35_spill] sm:$0xff] %v2885_v24  ;;  %v751_v20 = vadd.f32 %v743_v34, %v733_v19  ;;  %v760_v36 = vmul.f32 %v2712_v48, %v2755_v52  ;;  %v1000_v24 = vmul.f32 %v2597_v0, %v2879_v50  ;;  %v1001_v37 = vmul.f32 %v2601_v40, %v2879_v50  ;;  %v1537_v45 = vld [vmem:[%s1859_s7 + $0x70] sm:$0xff] }
 0x10a   : >> { %3329 = vst [vmem:[#allocation36_spill] sm:$0xff] %v2900_v55  ;;  %v1010_v19 = vmul.f32 %v2605_v33, %v2892_v56  ;;  %v1011_v34 = vmul.f32 %v2609_v28, %v2892_v56  ;;  %v2913_v31 = vstv %s2842_s27  ;;  %v735_v58 = vadd.f32 %v727_v44, %v717_v32 }
 0x10b   : >> { %v2881_v17 = vpop.permute.xlu1 %690  ;;  %v2883_v39 = vpop.permute.xlu0 %688  ;;  %v745_v0 = vmul.f32 %v2618_v6, %v2746_v3  ;;  %v716_v40 = vmul.f32 %v1536_v9, %v2726_v51  ;;  %v726_v33 = vmul.f32 %v1537_v45, %v2729_v43  ;;  %v395_v28 = vsel %vm234_vm1, %v2590_v57, 0.0 }
 0x10c   : >> { %3326 = vst [vmem:[#allocation33_spill] sm:$0xff] %v2881_v17  ;;  %3327 = vst [vmem:[#allocation34_spill] sm:$0xff] %v2883_v39  ;;  %v742_v39 = vmul.f32 %v2675_v16, %v2746_v3  ;;  %v2898_v17 = vadd.f32 %v471_v54, %v392_v42  ;;  %v2928_v42 = vadd.f32 %v761_v12, %v751_v20  ;;  %v394_v44 = vsel %vm234_vm1, %v2594_v4, 0.0 }
 0x10d   : >> { %v763_v32 = vmul.f32 %v2663_v15, %v2755_v52  ;;  %v1028_v51 = vmul.f32 %v2642_v23, %v2913_v31  ;;  %v1029_v43 = vmul.f32 %v2647_v10, %v2913_v31  ;;  %v1018_v57 = vadd.f32 %v1010_v19, %v1000_v24  ;;  %v1538_v10 = vld [vmem:[%s1859_s7 + $0xb0] sm:$0xff]  ;;  %s1425_s7 = sshll.u32 %s1662_s12, 6  ;;  %s242_s12 = sadd.s32 1, %s1662_s12  }
 0x10e   : >> { %3331 = vst [vmem:[#allocation38_spill] sm:$0xff] %v2928_v42  ;;  %v750_v55 = vadd.f32 %v742_v39, %v732_v29  ;;  %v1019_v12 = vadd.f32 %v1011_v34, %v1001_v37  ;;  %v999_v39 = vmul.f32 %v2575_v35, %v2879_v50  ;;  %v1009_v29 = vmul.f32 %v2583_v63, %v2892_v56  ;;  %v3333_v37 = vld [vmem:[#allocation15_spill] sm:$0xff]  ;;  %s3157_s30 = scalar_lea.vmem %s1850_s24, %s1425_s7 [#allocation8]  ;;  %p239_p5 = scmp.ge.s32.totalorder %s242_s12, 2  }
 0x10f   : >> { %v2915_v54 = vpop.permute.xlu1 %846  ;;  %v2917_v62 = vpop.permute.xlu0 %844  ;;  %v2947_v20 = vadd.f32 %v2827_v22, %v395_v28  ;;  %v753_v23 = vadd.f32 %v745_v0, %v735_v58  ;;  %v734_v60 = vadd.f32 %v726_v33, %v716_v40  ;;  %v744_v61 = vmul.f32 %v1538_v10, %v2746_v3  ;;  %v3335_v22 = vld [vmem:[#allocation22_spill] sm:$0xff]  ;;  %v3339_v33 = vld [vmem:[#allocation13_spill] sm:$0xff]  ;;  %s1435_s13 = sshll.u32 (%p239_p5), %s1717_s2, 11  ;;  %s1247_s8 = sshll.u32 (%p239_p5), %s1850_s24, 4  ;;  %s3236_s8 = int_to_ptr.vmem [resolvable:$true] %s1247_s8 }
 0x110   : >> { %3330 = vst [vmem:[#allocation37_spill] sm:$0xff] %v2917_v62  ;;  %v2940_v62 = vstv %s2871_s21  ;;  %v2956_v24 = vadd.f32 %v2836_v5, %v394_v44  ;;  %v597_v35 = vsel %vm235_vm2, %v3333_v37, 0.0  ;;  %v2961_v63 = vadd.f32 %v760_v36, %v750_v55  ;;  %v3338_v36 = vld [vmem:[#allocation14_spill] sm:$0xff]  ;;  %s3233_s20 = scalar_lea.hbm (%p239_p5), %s3282_s3, %s1435_s13  ;;  %s1233_s9 = scalar_lea.sflag (%p239_p5), [#allocation5], %s1822_s18 }
 0x111   : >> { %v762_v19 = vmul.f32 %v3335_v22, %v2755_v52  ;;  %v1046_v3 = vmul.f32 %v2685_v21, %v2940_v62  ;;  %v1047_v5 = vmul.f32 %v2690_v30, %v2940_v62  ;;  %v1002_v55 = vmul.f32 %v2625_v14, %v2879_v50  ;;  %v3340_v14 = vld [vmem:[#allocation16_spill] sm:$0xff]  ;;  %s1584_s10 = scalar_lea.vmem (%p239_p5), %s3236_s8, 2048  ;;  %p3367_p8 = scmp.ne.s32.totalorder (%p239_p5), %s3295_s25, 0 }
 0x112   : >> { %3334 = vst [vmem:[#allocation15_spill] sm:$0xff] %v2961_v63  ;;  %v1012_v52 = vmul.f32 %v3338_v36, %v2892_v56  ;;  %v1036_v58 = vadd.f32 %v1028_v51, %v1018_v57  ;;  %v1037_v0 = vadd.f32 %v1029_v43, %v1019_v12  ;;  %v1017_v40 = vadd.f32 %v1009_v29, %v999_v39  ;;  %v3341_v51 = vld [vmem:[#allocation18_spill] sm:$0xff]  ;;  %p1585_p12 = scmp.ne.s32.totalorder (%p239_p5), %s3236_s8, %s1584_s10  ;;  %s1670_s29 = smov (%p239_p5), [#allocation8]  }
 0x113   : >> { %v2949_v4 = vpop.permute.xlu1 %850  ;;  %v2951_v42 = vpop.permute.xlu0 %848  ;;  %v1027_v28 = vmul.f32 %v3339_v33, %v2913_v31  ;;  %v605_v44 = vadd.f32 %v597_v35, %v485_v18  ;;  %v2987_v21 = vadd.f32 %v763_v32, %v753_v23  ;;  %v752_v30 = vadd.f32 %v744_v61, %v734_v60  ;;  %v3342_v35 = vld [vmem:[#allocation17_spill] sm:$0xff] }
 0x114   : >> { %3332 = vst [vmem:[#allocation39_spill] sm:$0xff] %v2951_v42  ;;  %v2990_v42 = vstv %s1837_s6  ;;  %v596_v36 = vsel %vm2969_vm7, %v3340_v14, 0.0  ;;  %v599_v43 = vsel %vm235_vm2, %v3341_v51, 0.0  ;;  %v1003_v18 = vmul.f32 %v2635_v46, %v2879_v50  ;;  %p1586_p9 = pnand (%p239_p5), %p1585_p12, %p3367_p8  ;;  %s1588_s6 = sshll.u32 (%p239_p5), %s1670_s29, 4  ;;  %s1589_s6 = int_to_ptr.vmem [resolvable:$false] %s1588_s6 }
 0x115   : >> { %v1013_v57 = vmul.f32 %v2860_v7, %v2892_v56  ;;  %v1020_v12 = vadd.f32 %v1012_v52, %v1002_v55  ;;  %v1030_v60 = vmul.f32 %v2668_v41, %v2913_v31  ;;  %v1004_v61 = vmul.f32 %v2814_v59, %v2879_v50  ;;  %v3343_v55 = vld [vmem:[#allocation19_spill] sm:$0xff]  ;;  %s1590_s2 = scalar_lea.vmem (%p239_p5), %s1589_s6, 4096  ;;  %p1591_p1 = scmp.lt.s32.totalorder (%p239_p5), %s3236_s8, %s1589_s6 }
 0x116   : >> { %v1014_v32 = vmul.f32 %v2819_v13, %v2892_v56  ;;  %v1054_v39 = vadd.f32 %v1046_v3, %v1036_v58  ;;  %v3008_v29 = vadd.f32 %v1047_v5, %v1037_v0  ;;  %v1035_v23 = vadd.f32 %v1027_v28, %v1017_v40  ;;  %p1587_p10 = pneg (%p239_p5), %p1586_p9  ;;  %p1592_p4 = scmp.lt.s32.totalorder (%p239_p5), %s1590_s2, %s1584_s10 }
 0x117   : >> { %v2983_v37 = vpop.permute.xlu1 %854  ;;  %v2985_v63 = vpop.permute.xlu0 %852  ;;  %v1045_v46 = vmul.f32 %v3342_v35, %v2940_v62  ;;  %v604_v34 = vadd.f32 %v596_v36, %v2844_v26  ;;  %v607_v7 = vadd.f32 %v599_v43, %v2864_v8  ;;  %v598_v41 = vsel %vm235_vm2, %v3343_v55, 0.0  ;;  %v3349_v35 = vld [vmem:[#allocation26_spill] sm:$0xff] }
 0x118   : >> { %v3019_v59 = vadd.f32 %v762_v19, %v752_v30  ;;  %v1021_v3 = vadd.f32 %v1013_v57, %v1003_v18  ;;  %v1031_v5 = vmul.f32 %v2675_v16, %v2913_v31  ;;  %v1005_v58 = vmul.f32 %v1536_v9, %v2879_v50  ;;  %v3344_v16 = vld [vmem:[#allocation20_spill] sm:$0xff]  ;;  %p1593_p11 = por (%p239_p5), %p1592_p4, %p1591_p1 }
 0x119   : >> { %v1015_v26 = vmul.f32 %v1537_v45, %v2892_v56  ;;  %v1038_v0 = vadd.f32 %v1030_v60, %v1020_v12  ;;  %v1048_v8 = vmul.f32 %v2701_v47, %v2940_v62  ;;  %v1022_v40 = vadd.f32 %v1014_v32, %v1004_v61  ;;  %v3345_v45 = vld [vmem:[#allocation21_spill] sm:$0xff] }
 0x11a   : >> { %v1032_v33 = vmul.f32 %v2680_v53, %v2913_v31  ;;  %v606_v19 = vadd.f32 %v598_v41, %v2823_v38  ;;  %v1062_v28 = vrot.slane %v1054_v39, 1  ;;  %v1063_v30 = vrot.slane %v3008_v29, 1  ;;  %v3346_v12 = vld [vmem:[#allocation25_spill] sm:$0xff]  ;;  %v3348_v29 = vld [vmem:[#allocation24_spill] sm:$0xff]  ;;  %p1594_p0 = pnand (%p239_p5), %p1593_p11, %p1587_p10 }
 0x11b   : >> { %v3017_v52 = vpop.permute.xlu1 %858  ;;  %v3021_v13 = vpop.permute.xlu0 %856  ;;  %v3033_v14 = vadd.f32 %v1045_v46, %v1035_v23  ;;  %v601_v9 = vsel %vm235_vm2, %v3344_v16, 0.0  ;;  %v600_v36 = vsel %vm235_vm2, %v3345_v45, 0.0  ;;  %v1006_v51 = vmul.f32 %v2579_v27, %v2879_v50  ;;  %v3350_v45 = vld [vmem:[#allocation27_spill] sm:$0xff] }
 0x11c   : >> { %v1016_v53 = vmul.f32 %v2587_v11, %v2892_v56  ;;  %v1039_v38 = vadd.f32 %v1031_v5, %v1021_v3  ;;  %v1049_v43 = vmul.f32 %v2712_v48, %v2940_v62  ;;  %v1023_v18 = vadd.f32 %v1015_v26, %v1005_v58  ;;  %v3347_v11 = vld [vmem:[#allocation23_spill] sm:$0xff] }
 0x11d   : >> { %v1033_v57 = vmul.f32 %v1538_v10, %v2913_v31  ;;  %v693_v60 = vsel %vm234_vm1, %v3346_v12, 0.0  ;;  %v1056_v32 = vadd.f32 %v1048_v8, %v1038_v0  ;;  %v1040_v39 = vadd.f32 %v1032_v33, %v1022_v40 }
 0x11e   : >> { %v1050_v27 = vmul.f32 %v2717_v25, %v2940_v62  ;;  %v609_v50 = vadd.f32 %v601_v9, %v2894_v49  ;;  %v603_v56 = vsel %vm235_vm2, %v3347_v11, 0.0  ;;  %v3059_v48 = vsel %vm948_vm5, %v1062_v28, %v1063_v30 }
 0x11f   : >> { %v960_v47 = vpop.permute.xlu1 %959  ;;  %v1061_v10 = vrot.slane %v3033_v14, 1  ;;  %v602_v23 = vsel %vm235_vm2, %v3348_v29, 0.0  ;;  %v692_v25 = vsel %vm234_vm1, %v3349_v35, 0.0  ;;  %v1024_v46 = vadd.f32 %v1016_v53, %v1006_v51  ;;  %v3353_v51 = vld [vmem:[#allocation29_spill] sm:$0xff]  ;;  %v3356_v29 = vld [vmem:[#allocation31_spill] sm:$0xff] }
 0x120   : >> { %v1034_v49 = vmul.f32 %v2618_v6, %v2913_v31  ;;  %v701_v55 = vadd.f32 %v693_v60, %v605_v44  ;;  %v1057_v3 = vadd.f32 %v1049_v43, %v1039_v38  ;;  %v1041_v5 = vadd.f32 %v1033_v57, %v1023_v18  ;;  %v3354_v57 = vld [vmem:[#allocation37_spill] sm:$0xff] }
 0x121   : >> { %v958_v61 = vpop.permute.xlu0 %957  ;;  %v1051_v58 = vmul.f32 %v3335_v22, %v2940_v62  ;;  %v608_v26 = vadd.f32 %v600_v36, %v2898_v17  ;;  %v611_v0 = vadd.f32 %v603_v56, %v2947_v20  ;;  %v1064_v40 = vrot.slane %v1056_v32, 1  ;;  %v3351_v22 = vld [vmem:[#allocation28_spill] sm:$0xff] }
 0x122   : >> { %v3074_v33 = vadd.f32 %v1050_v27, %v1040_v39  ;;  %v610_v16 = vadd.f32 %v602_v23, %v2956_v24  ;;  %v700_v9 = vadd.f32 %v692_v25, %v604_v34  ;;  %v695_v6 = vsel %vm234_vm1, %v3350_v45, 0.0  ;;  %v3352_v34 = vld [vmem:[#allocation30_spill] sm:$0xff]  ;;  %v3355_v39 = vld [vmem:[#allocation32_spill] sm:$0xff] }
 0x123   : >> { %v1075_v31 = vsel %vm948_vm5, %v1061_v10, %v1062_v28  ;;  %v694_v17 = vsel %vm234_vm1, %v3351_v22, 0.0  ;;  %v861_v20 = vsel %vm235_vm2, %v2915_v54, 0.0  ;;  %v1042_v44 = vadd.f32 %v1034_v49, %v1024_v46 }
 0x124   : >> { %v964_v41 = vpop.permute.xlu1 %963  ;;  %v1052_v24 = vmul.f32 %v2663_v15, %v2940_v62  ;;  %v697_v36 = vsel %vm234_vm1, %v3352_v34, 0.0  ;;  %v773_v53 = vadd.f32 %v3353_v51, %v701_v55  ;;  %v1065_v28 = vrot.slane %v1057_v3, 1 }
 0x125   : >> { %v962_v8 = vpop.permute.xlu0 %961  ;;  %v3096_v43 = vadd.f32 %v1051_v58, %v1041_v5  ;;  %v703_v18 = vadd.f32 %v695_v6, %v607_v7  ;;  %v860_v12 = vsel %vm235_vm2, %v3354_v57, 0.0  ;;  %v982_v54 = vsel %vm234_vm1, %v960_v47, 0.0  ;;  %v3357_v47 = vld [vmem:[#allocation33_spill] sm:$0xff]  ;;  %v3360_v6 = vld [vmem:[#allocation39_spill] sm:$0xff] }
 0x126   : >> { %v1066_v15 = vrot.slane %v3074_v33, 1  ;;  %v702_v62 = vadd.f32 %v694_v17, %v606_v19  ;;  %v869_v32 = vadd.f32 %v861_v20, %v773_v53  ;;  %v772_v27 = vadd.f32 %v3355_v39, %v700_v9  ;;  %v3359_v9 = vld [vmem:[#allocation36_spill] sm:$0xff]  ;;  %v3361_v20 = vld [vmem:[#allocation34_spill] sm:$0xff] }
 0x127   : >> { %v1073_v11 = vsel %vm948_vm5, %v1063_v30, %v1064_v40  ;;  %v705_v56 = vadd.f32 %v697_v36, %v609_v50  ;;  %v696_v7 = vsel %vm234_vm1, %v3356_v29, 0.0  ;;  %v981_v23 = vsel %vm234_vm1, %v958_v61, 0.0  ;;  %v3358_v50 = vld [vmem:[#allocation35_spill] sm:$0xff] }
 0x128   : >> { %v968_v38 = vpop.permute.xlu1 %967  ;;  %v3112_v35 = vadd.f32 %v1052_v24, %v1042_v44  ;;  %v699_v19 = vsel %vm234_vm1, %v3357_v47, 0.0  ;;  %v868_v25 = vadd.f32 %v860_v12, %v772_v27  ;;  %v990_v46 = vadd.f32 %v982_v54, %v869_v32  ;;  %v3363_v54 = vld [vmem:[#allocation15_spill] sm:$0xff] }
 0x129   : >> { %v966_v60 = vpop.permute.xlu0 %965  ;;  %v1072_v30 = vsel %vm948_vm5, %v1064_v40, %v1065_v28  ;;  %v775_v55 = vadd.f32 %v3358_v50, %v703_v18  ;;  %v863_v61 = vsel %vm235_vm2, %v2949_v4, 0.0  ;;  %v1067_v5 = vrot.slane %v3096_v43, 1  ;;  %v3362_v4 = vld [vmem:[#allocation38_spill] sm:$0xff] }
 0x12a   : >> { %v1071_v58 = vsel %vm948_vm5, %v1065_v28, %v1066_v15  ;;  %v704_v33 = vadd.f32 %v696_v7, %v608_v26  ;;  %v774_v45 = vadd.f32 %v3359_v9, %v702_v62  ;;  %v862_v40 = vsel %vm235_vm2, %v3360_v6, 0.0 }
 0x12b   : >> { %v989_v22 = vadd.f32 %v981_v23, %v868_v25  ;;  %v707_v17 = vadd.f32 %v699_v19, %v611_v0  ;;  %v698_v44 = vsel %vm234_vm1, %v3361_v20, 0.0  ;;  %v777_v24 = vadd.f32 %v3362_v4, %v705_v56 }
 0x12c   : >> { %v3117_v49 = vpop.permute.xlu1 %971  ;;  %v1068_v34 = vrot.slane %v3112_v35, 1  ;;  %v871_v36 = vadd.f32 %v863_v61, %v775_v55  ;;  %v984_v26 = vsel %vm234_vm1, %v964_v41, 0.0  ;;  %v983_v51 = vsel %vm234_vm1, %v962_v8, 0.0 }
 0x12d   : >> { %v970_v3 = vpop.permute.xlu0 %969  ;;  %v1086_v0 = vadd.f32 %v3059_v48, %v990_v46  ;;  %v870_v28 = vadd.f32 %v862_v40, %v774_v45  ;;  %v865_v18 = vsel %vm235_vm2, %v2983_v37, 0.0  ;;  %v864_v57 = vsel %vm235_vm2, %v2985_v63, 0.0 }
 0x12e   : >> { %v706_v12 = vadd.f32 %v698_v44, %v610_v16  ;;  %v776_v8 = vadd.f32 %v3363_v54, %v704_v33  ;;  %v1085_v32 = vadd.f32 %v1075_v31, %v989_v22  ;;  %v992_v39 = vadd.f32 %v984_v26, %v871_v36 }
 0x12f   : >> { %v991_v27 = vadd.f32 %v983_v51, %v870_v28  ;;  %v986_v48 = vsel %vm234_vm1, %v968_v38, 0.0  ;;  %v985_v37 = vsel %vm234_vm1, %v966_v60, 0.0  ;;  %v873_v56 = vadd.f32 %v865_v18, %v777_v24 }
 0x130   : >> { %v1176_v53 = vpop.permute.xlu1 %1175  ;;  %v872_v29 = vadd.f32 %v864_v57, %v776_v8  ;;  %v779_v31 = vadd.f32 %v2987_v21, %v707_v17  ;;  %v1070_v35 = vsel %vm948_vm5, %v1066_v15, %v1067_v5  ;;  %v1076_v47 = vsel %vm948_vm5, %v1068_v34, %v1061_v10 }
 0x131   : >> { %v1198_v41 = vsel %vm235_vm2, %v1176_v53, 0.0  ;;  %v867_v21 = vsel %vm235_vm2, %v3017_v52, 0.0  ;;  %v866_v19 = vsel %vm235_vm2, %v3021_v13, 0.0  ;;  %v994_v25 = vadd.f32 %v986_v48, %v873_v56 }
 0x132   : >> { %v1206_v62 = vadd.f32 %v1198_v41, %v1086_v0  ;;  %v993_v46 = vadd.f32 %v985_v37, %v872_v29  ;;  %v778_v50 = vadd.f32 %v3019_v59, %v706_v12  ;;  %v1088_v14 = vadd.f32 %v1072_v30, %v992_v39 }
 0x133   : >> { %v1174_v63 = vpop.permute.xlu0 %1173  ;;  %v1087_v61 = vadd.f32 %v1073_v11, %v991_v27  ;;  %v988_v52 = vsel %vm3167_vm8, %v3117_v49, 0.0  ;;  %v987_v33 = vsel %vm234_vm1, %v970_v3, 0.0  ;;  %v875_v59 = vadd.f32 %v867_v21, %v779_v31 }
 0x134   : >> { %v1215_v16 = vadd.f32 %v2990_v42, %v1206_v62  ;;  %v1197_v7 = vsel %vm235_vm2, %v1174_v63, 0.0  ;;  %v874_v45 = vadd.f32 %v866_v19, %v778_v50  ;;  %v1090_v6 = vadd.f32 %v1070_v35, %v994_v25 }
 0x135   : >> { %v1205_v60 = vadd.f32 %v1197_v7, %v1085_v32  ;;  %v1089_v40 = vadd.f32 %v1071_v58, %v993_v46  ;;  %v996_v22 = vadd.f32 %v988_v52, %v875_v59  ;;  %v1084_v36 = vsel %vm233_vm3, %v1076_v47, 0.0 }
 0x136   : >> { %1225 = vst [vmem:[%s3157_s30 + $0x8] sm:$0xff] %v1215_v16  ;;  %v995_v49 = vadd.f32 %v987_v33, %v874_v45  ;;  %v1069_v58 = vsel %vm948_vm5, %v1067_v5, %v1068_v34 }
 0x137   : >> { %v1214_v15 = vadd.f32 %v2990_v42, %v1205_v60  ;;  %v1180_v55 = vpop.permute.xlu1 %1179  ;;  %v1178_v10 = vpop.permute.xlu0 %1177  ;;  %v1092_v43 = vadd.f32 %v1084_v36, %v996_v22 }
 0x138   : >> { %v1200_v13 = vsel %vm235_vm2, %v1180_v55, 0.0  ;;  %v1199_v9 = vsel %vm235_vm2, %v1178_v10, 0.0  ;;  %v1091_v18 = vadd.f32 %v1069_v58, %v995_v49 }
 0x139   : >> { %1224 = vst [vmem:[%s3157_s30] sm:$0xff] %v1214_v15  ;;  %v1208_v11 = vadd.f32 %v1200_v13, %v1088_v14  ;;  %v1207_v30 = vadd.f32 %v1199_v9, %v1087_v61 }
 0x13b   : >> { %v1217_v17 = vadd.f32 %v2990_v42, %v1208_v11  ;;  %v1216_v3 = vadd.f32 %v2990_v42, %v1207_v30  ;;  %v1184_v20 = vpop.permute.xlu1 %1183  ;;  %v1182_v44 = vpop.permute.xlu0 %1181 }
 0x13c   : >> { %v1202_v4 = vsel %vm235_vm2, %v1184_v20, 0.0  ;;  %v1201_v24 = vsel %vm235_vm2, %v1182_v44, 0.0 }
 0x13d   : >> { %1227 = vst [vmem:[%s3157_s30 + $0x18] sm:$0xff] %v1217_v17  ;;  %1226 = vst [vmem:[%s3157_s30 + $0x10] sm:$0xff] %v1216_v3  ;;  %v1210_v26 = vadd.f32 %v1202_v4, %v1090_v6  ;;  %v1209_v51 = vadd.f32 %v1201_v24, %v1089_v40 }
 0x13f   : >> { %v1219_v53 = vadd.f32 %v2990_v42, %v1210_v26  ;;  %v1218_v0 = vadd.f32 %v2990_v42, %v1209_v51  ;;  %v1188_v28 = vpop.permute.xlu1 %1187  ;;  %v1186_v57 = vpop.permute.xlu0 %1185  ;;  %241 = sbr.rel (!%p239_p5) target bundleno = 86 (0x56), region = 94 }
 0x140   : >> { %v1204_v5 = vsel %vm1196_vm9, %v1188_v28, 0.0  ;;  %v1203_v34 = vsel %vm235_vm2, %v1186_v57, 0.0 }
 0x141   : >> { %1229 = vst [vmem:[%s3157_s30 + $0x28] sm:$0xff] %v1219_v53  ;;  %1228 = vst [vmem:[%s3157_s30 + $0x20] sm:$0xff] %v1218_v0  ;;  %v1212_v41 = vadd.f32 %v1204_v5, %v1092_v43  ;;  %v1211_v12 = vadd.f32 %v1203_v34, %v1091_v18 }
 0x143   : >> { %v1221_v54 = vadd.f32 %v2990_v42, %v1212_v41  ;;  %v1220_v8 = vadd.f32 %v2990_v42, %v1211_v12 }
 0x145   : >> { %1231 = vst [vmem:[%s3157_s30 + $0x38] sm:$0xff] %v1221_v54  ;;  %1230 = vst [vmem:[%s3157_s30 + $0x30] sm:$0xff] %v1220_v8 }
 0x146   : > { %1597 = shalt.err (!%p1594_p0)
}
 0x147   : > { %s1598_s24 = scalar_lea.hbm %s3233_s20, 2048  ;;  %s1602_s23 = scalar_lea.hbm %s3282_s3, 8192 }
 0x148   : > { %p1599_p2 = scmp.ne.s32.totalorder %s3233_s20, %s1598_s24  ;;  %p1603_p3 = scmp.lt.u32.totalorder %s3233_s20, %s3282_s3 }
 0x149   : > { %p1604_p13 = scmp.lt.u32.totalorder %s1602_s23, %s1598_s24  ;;  %p1606_p12 = scmp.lt.u32.totalorder %s1598_s24, %s3233_s20 }
 0x14a   : > { %p1600_p7 = pnand %p1599_p2, %p3367_p8 }
 0x14b   : > { %p1605_p5 = por %p1604_p13, %p1603_p3 }
 0x14c   : > { %p1601_p6 = pneg %p1600_p7 }
 0x14d   : > { %p1607_p9 = por %p1606_p12, %p1605_p5 }
 0x14f   : > { %p1608_p10 = pnand %p1607_p9, %p1601_p6 }
 0x151   : > { %1611 = shalt.err (!%p1608_p10)
}
 0x152   : > { %s1671_s21 = smov 128   ;;  %s1672_s7 = smov 8  }
 0x153   : > { %1442 = dma.vmem_to_hbm [thread:$0]  (%p3367_p8), %s3236_s8, 2048, %s3233_s20, %s1233_s9, %s1671_s21, %s1671_s21, %s1672_s7  }
 0x154 PF: > { %p1459_p1 = scmp.ge.s32.totalorder %s1658_s17, 2  ;;  %s1262_s30 = sand.u32 1, %s1646_s14  }
 0x155   : > { %p3368_p4 = scmp.ne.s32.totalorder %s3296_s26, 0  ;;  %s1263_s13 = scalar_lea.sflag [#allocation5], %s1262_s30 }
 0x157   : > { %p1453_p11 = pnand %p1459_p1, %p3368_p4 }
 0x159   : > { %1641 = dma.done.wait (!%p1453_p11), %s1263_s13, 2048  }
 0x15a   : > { %1643 = vsyncadd (!%p1453_p11), %s1263_s13, 4294965248  ;;  %p18_p0 = scmp.ge.s32.totalorder %s1721_s19, 6   ;;  %s3369_s14 = smov %s1650_s15 }
 0x15b   : > { %s3370_s15 = smov %s1654_s16  ;;  %s3371_s16 = smov %s1733_s22 }
 0x15c   : > { %s3372_s17 = smov %s1721_s19  ;;  %20 = sbr.rel (!%p18_p0) target bundleno = 8 (0x8), region = 105 }
 0x163   :  { %1268 = vsyncpa [#allocation4], 1 }
 0x164   :  { %1270 = vsyncpa [#allocation4 + $0x1], 1 }
 0x165   :  { %1271 = vsyncpa [#allocation5], 1 }
 0x166   :  { %1273 = vsyncpa [#allocation5 + $0x1], 1 }
 0x167   :  { %1274 = vsyncpa [#allocation6], 1 }
 0x168   :  { %1276 = vsyncpa [#allocation6 + $0x1], 1 }

</bundles_post_ra>
